<compile_context>
chip_gen: v6e
topology: v6e:2x2x1
jax: 0.10.0
libtpu: 0.0.40
codegen_flags: <defaults>
</compile_context>

<pallas_src>
import functools
import math

import jax
import jax.numpy as jnp
from jax.experimental import pallas as pl
from jax.experimental.pallas import tpu as pltpu


def _embed_kernel(idx_ref, table_ref, out_ref, *, slab):
    """One grid step: emit tile_r*P token embeddings, `slab` rows at a time.

    idx_ref:   (tile_r, P)        int32  packed token ids (P tokens / row)
    table_ref: (P*vocab, P*dim)   f32    block-diagonal replicated table
    out_ref:   (tile_r, P*dim)    f32    lane-dense packed embeddings
    """
    tile_r, p = idx_ref.shape
    pv = table_ref.shape[0]
    vocab = pv // p

    table = table_ref[...]                                     # tiny, stays live
    # Column offset of packed token-slot g inside the block-diagonal table,
    # folded into the indices with a single vector add.
    offs = jax.lax.broadcasted_iota(jnp.int32, (1, p), 1) * vocab

    n_slabs = tile_r // slab

    def body(s, carry):
        r0 = pl.multiple_of(s * slab, slab)
        idx = idx_ref[pl.ds(r0, slab), :] + offs                # (slab, P)
        lane = jax.lax.broadcasted_iota(jnp.int32, (slab, pv), 1)
        # Per-slot column ranges are disjoint -> boolean OR is an exact union.
        hit = lane == idx[:, 0:1]
        for g in range(1, p):                                   # P <= 4, unrolled
            hit = jnp.logical_or(hit, lane == idx[:, g:g + 1])
        onehot = hit.astype(table.dtype)
        out_ref[pl.ds(r0, slab), :] = jnp.dot(
            onehot, table,
            preferred_element_type=jnp.float32,
            precision=jax.lax.Precision.HIGHEST,                # bit-exact gather
        ).astype(out_ref.dtype)
        return carry

    jax.lax.fori_loop(0, n_slabs, body, 0)


def _round_up(a, b):
    return ((a + b - 1) // b) * b


def make_packed_table(table, p):
    """Block-diagonal table: P copies of (vocab, dim) on the diagonal.

    Hoist this out of the hot path (and pass via `packed_table=`) when the
    table is a fixed parameter.
    """
    if p == 1:
        return table
    return jnp.kron(jnp.eye(p, dtype=table.dtype), table)


def digit_embedding_forward(x, table, *, max_tile_rows=2048, slab_rows=256,
                            min_pallas_tokens=2048, packed_table=None):
    """x: int array of any shape; table: (vocab, dim). Returns x.shape + (dim,)."""
    orig_shape = x.shape
    vocab, dim = table.shape
    n = math.prod(orig_shape) if orig_shape else 1

    # ---- fast paths --------------------------------------------------------
    # (a) tiny token counts: a single-step pallas_call cannot amortize its
    #     launch + per-step overhead; the plain XLA gather wins outright.
    # (b) non-tiny vocab: the block-diagonal table / one-hot K blows up VMEM;
    #     this kernel targets digit-sized vocabularies.
    # TODO(synk): scalar-prefetch / DMA-gather kernel for large vocabularies.
    if n < min_pallas_tokens or vocab > 256:
        return table[x]

    # Pack P tokens per output row so the output last dim is lane-dense
    # (P*dim == 128); falls back to P = 1 if dim does not divide 128.
    p = 128 // dim if (dim <= 128 and 128 % dim == 0) else 1

    # Tile geometry: slab = in-kernel vreg-pressure chunk, tile = grid block.
    slab = max(8, (slab_rows // 8) * 8)
    max_rows = min(max_tile_rows, 4096)               # v5e scoped-VMEM headroom
    max_rows = max(slab, (max_rows // slab) * slab)   # tile must be slab-aligned

    idx_flat = x.reshape(-1).astype(jnp.int32)
    rows = -(-n // p)
    rows_aligned = _round_up(max(rows, 1), slab)
    tile_r = min(max_rows, rows_aligned)
    rows_pad = _round_up(rows_aligned, tile_r)
    n_pad = rows_pad * p

    if n_pad != n:
        idx_flat = jnp.pad(idx_flat, (0, n_pad - n))  # pad with token id 0
    idx_mat = idx_flat.reshape(rows_pad, p)

    if packed_table is None:
        packed_table = make_packed_table(table, p)

    grid = (rows_pad // tile_r,)
    out_mat = pl.pallas_call(
        functools.partial(_embed_kernel, slab=slab),
        out_shape=jax.ShapeDtypeStruct((rows_pad, p * dim), table.dtype),
        grid_spec=pltpu.PrefetchScalarGridSpec(
            num_scalar_prefetch=0,
            grid=grid,
            in_specs=[
                pl.BlockSpec((tile_r, p), lambda i: (i, 0)),
                pl.BlockSpec((p * vocab, p * dim), lambda i: (0, 0)),
            ],
            out_specs=pl.BlockSpec((tile_r, p * dim), lambda i: (i, 0)),
        ),
        compiler_params=pltpu.CompilerParams(
            # Independent output tiles: shard across both TCs on v7x and
            # software-pipeline the writeback on all generations.
            dimension_semantics=("parallel",),
        ),
    )(idx_mat, packed_table)

    out_flat = out_mat.reshape(rows_pad * p, dim)
    if n_pad != n:
        # NOTE: this slice is a full XLA copy of the output; it only triggers
        # when the token count isn't a multiple of tile_r*P.  Size inputs (or
        # consume the padded buffer) to avoid it when at roofline matters.
        out_flat = out_flat[:n]
    return out_flat.reshape(*orig_shape, dim)


if __name__ == "__main__":
    n_digits = 10
    embedding_dim = 32
    vocab = n_digits + 1           # includes BOS token id = n_digits
    batch, seq = 2, 8

    key = jax.random.PRNGKey(0)
    k_table, k_idx, k_big = jax.random.split(key, 3)

    # torch.nn.Embedding default init: N(0, 1)
    table = jax.random.normal(k_table, (vocab, embedding_dim), dtype=jnp.float32)

    # token indices in [0, vocab); first column forced to BOS token
    x = jax.random.randint(k_idx, (batch, seq), 0, vocab, dtype=jnp.int32)
    x = x.at[:, 0].set(n_digits)   # bos_token_id

    # Force the Pallas path even at this tiny size so the kernel is exercised.
    out = digit_embedding_forward(x, table, min_pallas_tokens=0)
    jax.block_until_ready(out)
    ref = table[x]
    assert out.shape == (batch, seq, embedding_dim), out.shape
    assert jnp.allclose(out, ref, atol=1e-6), "mismatch vs reference gather"

    # Larger case: exercises the multi-tile parallel grid / in-kernel slabs
    # with zero padding (no post-kernel slice copy).
    big_x = jax.random.randint(k_big, (4, 4096), 0, vocab, dtype=jnp.int32)
    big_out = digit_embedding_forward(big_x, table, max_tile_rows=1024)
    jax.block_until_ready(big_out)
    assert big_out.shape == (4, 4096, embedding_dim), big_out.shape
    assert jnp.allclose(big_out, table[big_x], atol=1e-6), "mismatch (large case)"

    print("KERNEL_OK")
</pallas_src>

<mosaic_0001>
module attributes {stable_mosaic.version = 11 : i64} {
  func.func @_embed_kernel(%arg0: i32, %arg1: memref<256x4xi32, #tpu.memory_space<vmem>>, %arg2: memref<44x128xf32, #tpu.memory_space<vmem>>, %arg3: memref<256x128xf32, #tpu.memory_space<vmem>>) attributes {dimension_semantics = [#tpu.dimension_semantics<parallel>], iteration_bounds = array<i64: 1>, scalar_prefetch = 0 : i64, scratch_operands = 0 : i64, tpu.core_type = #tpu.core_type<tc>, window_params = [{transform_indices = @transform_0, window_bounds = array<i64: 256, 4>}, {pipeline_mode = #tpu.pipeline_mode<synchronous>, transform_indices = @transform_1, window_bounds = array<i64: 44, 128>}, {transform_indices = @transform_2, window_bounds = array<i64: 256, 128>}]} {
    %c0 = arith.constant 0 : index
    %c0_0 = arith.constant 0 : index
    %0 = vector.load %arg2[%c0, %c0_0] : memref<44x128xf32, #tpu.memory_space<vmem>>, vector<44x128xf32>
    %1 = tpu.iota {dimensions = array<i32: 1>} : vector<1x4xi32>
    %c11_i32 = arith.constant 11 : i32
    %2 = vector.broadcast %c11_i32 : i32 to vector<1x4xi32>
    %3 = arith.muli %1, %2 : vector<1x4xi32>
    %c0_i32 = arith.constant 0 : i32
    %c256_i32 = arith.constant 256 : i32
    %4 = arith.muli %c0_i32, %c256_i32 : i32
    %5 = tpu.assume_multiple %4, 256 : i32
    %6 = arith.index_cast %5 : i32 to index
    %c0_1 = arith.constant 0 : index
    %7 = vector.load %arg1[%6, %c0_1] : memref<256x4xi32, #tpu.memory_space<vmem>>, vector<256x4xi32>
    %8 = vector.broadcast %3 : vector<1x4xi32> to vector<256x4xi32>
    %9 = arith.addi %7, %8 : vector<256x4xi32>
    %10 = tpu.iota {dimensions = array<i32: 1>} : vector<256x44xi32>
    %11 = vector.extract_strided_slice %9 {offsets = [0, 0], sizes = [256, 1], strides = [1, 1]} : vector<256x4xi32> to vector<256x1xi32>
    %12 = vector.broadcast %11 : vector<256x1xi32> to vector<256x44xi32>
    %13 = arith.cmpi eq, %10, %12 : vector<256x44xi32>
    %14 = vector.extract_strided_slice %9 {offsets = [0, 1], sizes = [256, 1], strides = [1, 1]} : vector<256x4xi32> to vector<256x1xi32>
    %15 = vector.broadcast %14 : vector<256x1xi32> to vector<256x44xi32>
    %16 = arith.cmpi eq, %10, %15 : vector<256x44xi32>
    %17 = arith.ori %13, %16 : vector<256x44xi1>
    %18 = vector.extract_strided_slice %9 {offsets = [0, 2], sizes = [256, 1], strides = [1, 1]} : vector<256x4xi32> to vector<256x1xi32>
    %19 = vector.broadcast %18 : vector<256x1xi32> to vector<256x44xi32>
    %20 = arith.cmpi eq, %10, %19 : vector<256x44xi32>
    %21 = arith.ori %17, %20 : vector<256x44xi1>
    %22 = vector.extract_strided_slice %9 {offsets = [0, 3], sizes = [256, 1], strides = [1, 1]} : vector<256x4xi32> to vector<256x1xi32>
    %23 = vector.broadcast %22 : vector<256x1xi32> to vector<256x44xi32>
    %24 = arith.cmpi eq, %10, %23 : vector<256x44xi32>
    %25 = arith.ori %21, %24 : vector<256x44xi1>
    %26 = arith.extui %25 : vector<256x44xi1> to vector<256x44xi32>
    %27 = arith.sitofp %26 : vector<256x44xi32> to vector<256x44xf32>
    %cst = arith.constant dense<0.000000e+00> : vector<256x128xf32>
    %28 = tpu.matmul %27, %0, %cst {dimension_numbers = #tpu.dot_dimension_numbers<[1], [0], [0], [1], [0, 0, 1, 1], [], []>, precision = #tpu.contract_precision<fp32>} : vector<256x44xf32>, vector<44x128xf32>, vector<256x128xf32> -> vector<256x128xf32>
    %29 = arith.index_cast %5 : i32 to index
    %c0_2 = arith.constant 0 : index
    %30 = vector.load %arg3[%29, %c0_2] : memref<256x128xf32, #tpu.memory_space<vmem>>, vector<256x128xf32>
    tpu.vector_store %arg3[%29, %c0_2], %28 {strides = array<i32>} : memref<256x128xf32, #tpu.memory_space<vmem>>, vector<256x128xf32>,
    %c1_i32 = arith.constant 1 : i32
    return
  }
  func.func @transform_0(%arg0: i32) -> (i32, i32) {
    %c0_i32 = arith.constant 0 : i32
    %c0_i32_0 = arith.constant 0 : i32
    return %arg0, %c0_i32 : i32, i32
  }
  func.func @transform_1(%arg0: i32) -> (i32, i32) {
    %c0_i32 = arith.constant 0 : i32
    %c0_i32_0 = arith.constant 0 : i32
    %c0_i32_1 = arith.constant 0 : i32
    return %c0_i32, %c0_i32_0 : i32, i32
  }
  func.func @transform_2(%arg0: i32) -> (i32, i32) {
    %c0_i32 = arith.constant 0 : i32
    %c0_i32_0 = arith.constant 0 : i32
    return %arg0, %c0_i32 : i32, i32
  }
}

</mosaic_0001>

<bundles_post_ra>
// kernel: tpu_custom_call.1
= control target key start
LH: loop header
LB: loop body
LE: loop exit
PB: predicated region body
PF: predicated region fallthrough
CT: control target
= control target key end

     0   :  { %v18_v0 = vlaneseq  ;;  %v5392_v1 = vmov 1   ;;  %v5388_v2 = vmov 0   ;;  %s5385_s0 = inlined_call_operand.vmem [shape: s32[256,4], index: 0, kind: input, shape index: {}]   ;;  %s5386_s1 = inlined_call_operand.vmem [shape: f32[44,128], index: 1, kind: input, shape index: {}]   ;;  %s5387_s2 = inlined_call_operand.hbm [shape: f32[256,128], index: 2, kind: output, shape index: {}]  }
   0x1   :  { %3475 = vset.pattern.permute.xlu0 %v5392_v1  ;;  %3474 = vset.pattern.permute.xlu1 %v5388_v2  ;;  %v23_v4 = vld [vmem:[%s5385_s0 + $0x10] sm:$0xff]  ;;  %v21_v5 = vld [vmem:[%s5385_s0] sm:$0xff]  ;;  %v24_v7 = vld [vmem:[%s5385_s0 + $0x18] sm:$0xff] }
   0x2   :  { %v3586_v3 = vand.u32 127, %v18_v0 }
   0x4   :  { %v3595_v6 = vmul.u32 11, %v3586_v3 }
   0x6   :  { %v3601_v8 = vadd.s32 %v23_v4, %v3595_v6  ;;  %v3604_v9 = vadd.s32 %v21_v5, %v3595_v6  ;;  %v3609_v10 = vadd.s32 %v24_v7, %v3595_v6 }
   0x8   :  { %92 = vperm.xlu1 %3474, %v3601_v8   ;;  %214 = vperm.xlu0 %3475, %v3604_v9  }
   0x9   :  { %7 = vsyncpa [#allocation3], 0  ;;  %v26_v11 = vld [vmem:[%s5385_s0 + $0x28] sm:$0xff]  ;;  %v25_v12 = vld [vmem:[%s5385_s0 + $0x20] sm:$0xff]  ;;  %v5398_v35 = vmov 2   ;;  %v5390_v38 = vmov 3  }
   0xa   :  { %v3620_v13 = vadd.s32 %v26_v11, %v3595_v6  ;;  %v3623_v14 = vadd.s32 %v25_v12, %v3595_v6  ;;  %v28_v15 = vld [vmem:[%s5385_s0 + $0x38] sm:$0xff]  ;;  %v27_v16 = vld [vmem:[%s5385_s0 + $0x30] sm:$0xff]  ;;  %v30_v19 = vld [vmem:[%s5385_s0 + $0x48] sm:$0xff]  ;;  %vm854_vm0 = vcmask 1043456  }
   0xb   :  { %v3634_v17 = vadd.s32 %v28_v15, %v3595_v6  ;;  %v3637_v18 = vadd.s32 %v27_v16, %v3595_v6  ;;  %v29_v20 = vld [vmem:[%s5385_s0 + $0x40] sm:$0xff]  ;;  %v3648_v21 = vadd.s32 %v30_v19, %v3595_v6  ;;  %v32_v23 = vld [vmem:[%s5385_s0 + $0x58] sm:$0xff]  ;;  %v31_v24 = vld [vmem:[%s5385_s0 + $0x50] sm:$0xff] }
   0xc   :  { %95 = vperm.xlu1 %3474, %v3609_v10   ;;  %220 = vperm.xlu0 %3475, %v3601_v8   ;;  %v3651_v22 = vadd.s32 %v29_v20, %v3595_v6  ;;  %v3662_v25 = vadd.s32 %v32_v23, %v3595_v6  ;;  %v3665_v26 = vadd.s32 %v31_v24, %v3595_v6  ;;  %v34_v27 = vld [vmem:[%s5385_s0 + $0x68] sm:$0xff]  ;;  %v35_v31 = vld [vmem:[%s5385_s0 + $0x70] sm:$0xff]  ;;  %v40_v33 = vld [vmem:[%s5385_s0 + $0x98] sm:$0xff] }
   0xd   :  { %v22_v28 = vld [vmem:[%s5385_s0 + $0x8] sm:$0xff]  ;;  %v3676_v29 = vadd.s32 %v34_v27, %v3595_v6  ;;  %v3687_v32 = vadd.s32 %v35_v31, %v3595_v6  ;;  %v3695_v34 = vadd.s32 %v40_v33, %v3595_v6  ;;  %v41_v36 = vld [vmem:[%s5385_s0 + $0xa0] sm:$0xff]  ;;  %v36_v41 = vld [vmem:[%s5385_s0 + $0x78] sm:$0xff] }
   0xe   :  { %v3679_v30 = vadd.s32 %v22_v28, %v3595_v6  ;;  %v3704_v37 = vadd.s32 %v41_v36, %v3595_v6  ;;  %v33_v39 = vld [vmem:[%s5385_s0 + $0x60] sm:$0xff]  ;;  %v3722_v42 = vadd.s32 %v36_v41, %v3595_v6  ;;  %v39_v43 = vld [vmem:[%s5385_s0 + $0x90] sm:$0xff]  ;;  %v42_v45 = vld [vmem:[%s5385_s0 + $0xa8] sm:$0xff] }
   0xf   :  { %v3713_v40 = vadd.s32 %v33_v39, %v3595_v6  ;;  %v3731_v44 = vadd.s32 %v39_v43, %v3595_v6  ;;  %v3740_v46 = vadd.s32 %v42_v45, %v3595_v6  ;;  %v45_v47 = vld [vmem:[%s5385_s0 + $0xc0] sm:$0xff]  ;;  %v48_v49 = vld [vmem:[%s5385_s0 + $0xd8] sm:$0xff]  ;;  %v38_v51 = vld [vmem:[%s5385_s0 + $0x88] sm:$0xff] }
  0x10   :  { %101 = vperm.xlu1 %3474, %v3620_v13   ;;  %226 = vperm.xlu0 %3475, %v3623_v14   ;;  %v3748_v48 = vadd.s32 %v45_v47, %v3595_v6  ;;  %v3756_v50 = vadd.s32 %v48_v49, %v3595_v6  ;;  %v3783_v52 = vadd.s32 %v38_v51, %v3595_v6  ;;  %v44_v53 = vld [vmem:[%s5385_s0 + $0xb8] sm:$0xff]  ;;  %v17_v54 = vld [vmem:[%s5386_s1 + $0x28] sm:$0xf]  ;;  %v47_v58 = vld [vmem:[%s5385_s0 + $0xd0] sm:$0xff] }
  0x11   :  { %v856_v55 = vsel %vm854_vm0, %v17_v54, 0  ;;  %v3797_v56 = vadd.s32 %v44_v53, %v3595_v6  ;;  %v16_v60 = vld [vmem:[%s5386_s1 + $0x20] sm:$0xff]  ;;  %v3818_v62 = vadd.s32 %v47_v58, %v3595_v6  ;;  %v15_v0 = vld [vmem:[%s5386_s1 + $0x18] sm:$0xff]  ;;  %v50_v4 = vld [vmem:[%s5385_s0 + $0xe8] sm:$0xff] }
  0x12   :  { %5497 = vst [vmem:[#allocation5_spill] sm:$0xff] %v3748_v48  ;;  %5498 = vst [vmem:[#allocation6_spill] sm:$0xff] %v3756_v50  ;;  %v3799_v57 = vand.u32 4294901760, %v856_v55  ;;  %v3813_v61 = vand.u32 4294901760, %v16_v60  ;;  %v3832_v7 = vand.u32 4294901760, %v15_v0  ;;  %v3854_v15 = vadd.s32 %v50_v4, %v3595_v6  ;;  %v13_v23 = vld [vmem:[%s5386_s1 + $0x8] sm:$0xff] }
  0x13   :  { %5499 = vst [vmem:[#allocation7_spill] sm:$0xff] %v3818_v62  ;;  %v3868_v24 = vand.u32 4294901760, %v13_v23  ;;  %v12_v33 = vld [vmem:[%s5386_s1] sm:$0xff] }
  0x14   :  { %107 = vperm.xlu1 %3474, %v3634_v17   ;;  %232 = vperm.xlu0 %3475, %v3637_v18   ;;  %v3806_v59 = vsub.f32 %v856_v55, %v3799_v57  ;;  %v3830_v5 = vsub.f32 %v16_v60, %v3813_v61  ;;  %v3846_v12 = vsub.f32 %v15_v0, %v3832_v7  ;;  %v3885_v39 = vand.u32 4294901760, %v12_v33 }
  0x15   :  { %3106 = vmatprep.subr.mxu0 %v3799_v57  ;;  %5502 = vst [vmem:[#allocation10_spill] sm:$0xff] %v3854_v15  ;;  %v3883_v36 = vsub.f32 %v13_v23, %v3868_v24 }
  0x16   :  { %3107 = vmatpush3.msra.mxu0 %v3799_v57  ;;  %v3821_v63 = vand.u32 4294901760, %v3806_v59  ;;  %v3843_v11 = vand.u32 4294901760, %v3830_v5  ;;  %v3859_v19 = vand.u32 4294901760, %v3846_v12  ;;  %v3894_v47 = vsub.f32 %v12_v33, %v3885_v39 }
  0x17   :  { %3108 = vmatprep.subr.mxu0 %v3813_v61  ;;  %v3891_v45 = vand.u32 4294901760, %v3883_v36 }
  0x18   :  { %113 = vperm.xlu1 %3474, %v3648_v21   ;;  %238 = vperm.xlu0 %3475, %v3651_v22   ;;  %5500 = vst [vmem:[#allocation8_spill] sm:$0xff] %v3821_v63  ;;  %5501 = vst [vmem:[#allocation9_spill] sm:$0xff] %v3843_v11  ;;  %v1287_v28 = vsub.f32 %v3846_v12, %v3859_v19  ;;  %v3902_v53 = vand.u32 4294901760, %v3894_v47 }
  0x19   :  { %3109 = vmatpush3.msra.mxu0 %v3813_v61  ;;  %5503 = vst [vmem:[#allocation11_spill] sm:$0xff] %v3859_v19  ;;  %5505 = vst [vmem:[#allocation13_spill] sm:$0xff] %v3891_v45  ;;  %v1301_v51 = vsub.f32 %v3883_v36, %v3891_v45  ;;  %v5517_v19 = vmov 0  }
  0x1a   :  { %3110 = vmatprep.subr.mxu0 %v3832_v7  ;;  %v1288_v41 = vand.u32 4294901760, %v1287_v28  ;;  %5506 = vst [vmem:[#allocation14_spill] sm:$0xff] %v3902_v53  ;;  %v1308_v55 = vsub.f32 %v3894_v47, %v3902_v53  ;;  %v5515_v53 = vmov 3  }
  0x1b   :  { %3111 = vmatpush3.msra.mxu0 %v3832_v7  ;;  %v1302_v54 = vand.u32 4294901760, %v1301_v51 }
  0x1c   :  { %119 = vperm.xlu1 %3474, %v3662_v25   ;;  %244 = vperm.xlu0 %3475, %v3665_v26   ;;  %v1309_v58 = vand.u32 4294901760, %v1308_v55 }
  0x20   :  { %3476 = vset.pattern.permute.xlu1 %v5392_v1  ;;  %253 = vperm.xlu0 %3475, %v3676_v29  }
  0x21   :  { %217 = vperm.xlu1 %3476, %v3679_v30  }
  0x24   :  { %256 = vperm.xlu0 %3475, %v3687_v32  }
  0x25   :  { %3477 = vset.pattern.permute.xlu1 %v5398_v35 }
  0x26   :  { %374 = vperm.xlu1 %3477, %v3604_v9  }
  0x28   :  { %271 = vperm.xlu0 %3475, %v3695_v34  }
  0x2a   :  { %3478 = vset.pattern.permute.xlu1 %v5390_v38 }
  0x2b   :  { %534 = vperm.xlu1 %3478, %v3604_v9  }
  0x2c   :  { %274 = vperm.xlu0 %3475, %v3704_v37  }
  0x2f   :  { %537 = vperm.xlu1 %3478, %v3679_v30  }
  0x30   :  { %3511 = vset.pattern.permute.xlu0 %v5390_v38 }
  0x31   :  { %570 = vperm.xlu0 %3511, %v3713_v40  }
  0x33   :  { %3479 = vset.pattern.permute.xlu1 %v5392_v1 }
  0x34   :  { %223 = vperm.xlu1 %3479, %v3609_v10  }
  0x35   :  { %579 = vperm.xlu0 %3511, %v3722_v42  }
  0x38   :  { %3480 = vset.pattern.permute.xlu1 %v5398_v35 }
  0x39   :  { %380 = vperm.xlu1 %3480, %v3601_v8   ;;  %588 = vperm.xlu0 %3511, %v3731_v44  }
  0x3d   :  { %3481 = vset.pattern.permute.xlu1 %v5390_v38  ;;  %597 = vperm.xlu0 %3511, %v3740_v46  }
  0x3e   :  { %540 = vperm.xlu1 %3481, %v3601_v8   ;;  %v1273_v8 = vsub.f32 %v3806_v59, %v3821_v63 }
  0x40   :  { %v1274_v16 = vand.u32 4294901760, %v1273_v8 }
  0x41   :  { %606 = vperm.xlu0 %3511, %v3748_v48  }
  0x42   :  { %543 = vperm.xlu1 %3481, %v3609_v10   ;;  %3166 = vmatprep.subr.mxu1 %v1274_v16 }
  0x43   :  { %3167 = vmatpush3.msra.mxu1 %v1274_v16 }
  0x45   :  { %615 = vperm.xlu0 %3511, %v3756_v50  }
  0x46   :  { %3482 = vset.pattern.permute.xlu1 %v5392_v1 }
  0x47   :  { %229 = vperm.xlu1 %3482, %v3620_v13  }
  0x49   :  { %3527 = vset.pattern.permute.xlu0 %v5398_v35 }
  0x4a   :  { %377 = vperm.xlu0 %3527, %v3679_v30  }
  0x4b   :  { %3483 = vset.pattern.permute.xlu1 %v5398_v35 }
  0x4c   :  { %386 = vperm.xlu1 %3483, %v3623_v14  }
  0x4e   :  { %383 = vperm.xlu0 %3527, %v3609_v10   ;;  %v14_v10 = vld [vmem:[%s5386_s1 + $0x10] sm:$0xff] }
  0x50   :  { %3484 = vset.pattern.permute.xlu1 %v5390_v38 }
  0x51   :  { %546 = vperm.xlu1 %3484, %v3623_v14  }
  0x52   :  { %389 = vperm.xlu0 %3527, %v3620_v13  }
  0x55   :  { %549 = vperm.xlu1 %3484, %v3620_v13   ;;  %v3848_v13 = vand.u32 4294901760, %v14_v10 }
  0x56   :  { %395 = vperm.xlu0 %3527, %v3634_v17  }
  0x57   :  { %v3862_v20 = vsub.f32 %v14_v10, %v3848_v13  ;;  %3112 = vmatprep.subr.mxu0 %v3848_v13 }
  0x58   :  { %3113 = vmatpush3.msra.mxu0 %v3848_v13 }
  0x59   :  { %3485 = vset.pattern.permute.xlu1 %v5392_v1  ;;  %v3874_v31 = vand.u32 4294901760, %v3862_v20  ;;  %3114 = vmatprep.subr.mxu0 %v3868_v24 }
  0x5a   :  { %235 = vperm.xlu1 %3485, %v3634_v17   ;;  %401 = vperm.xlu0 %3527, %v3648_v21  }
  0x5b   :  { %5504 = vst [vmem:[#allocation12_spill] sm:$0xff] %v3874_v31  ;;  %v1294_v43 = vsub.f32 %v3862_v20, %v3874_v31  ;;  %3115 = vmatpush3.msra.mxu0 %v3868_v24 }
  0x5c   :  { %3116 = vmatprep.subr.mxu0 %v3885_v39 }
  0x5d   :  { %v1295_v49 = vand.u32 4294901760, %v1294_v43  ;;  %3117 = vmatpush3.msra.mxu0 %v3885_v39 }
  0x5e   :  { %3486 = vset.pattern.permute.xlu1 %v5398_v35  ;;  %407 = vperm.xlu0 %3527, %v3662_v25  }
  0x5f   :  { %392 = vperm.xlu1 %3486, %v3637_v18   ;;  %3226 = vmatprep.subr.mxu0 %v3806_v59 }
  0x62   :  { %416 = vperm.xlu0 %3527, %v3687_v32  }
  0x63   :  { %3487 = vset.pattern.permute.xlu1 %v5390_v38 }
  0x64   :  { %552 = vperm.xlu1 %3487, %v3637_v18  }
  0x66   :  { %425 = vperm.xlu0 %3527, %v3783_v52  }
  0x68   :  { %555 = vperm.xlu1 %3487, %v3634_v17   ;;  %v1280_v17 = vsub.f32 %v3830_v5, %v3843_v11 }
  0x6a   :  { %434 = vperm.xlu0 %3527, %v3704_v37   ;;  %v1281_v27 = vand.u32 4294901760, %v1280_v17 }
  0x6c   :  { %3488 = vset.pattern.permute.xlu1 %v5392_v1  ;;  %3168 = vmatprep.subr.mxu1 %v1281_v27 }
  0x6d   :  { %241 = vperm.xlu1 %3488, %v3648_v21   ;;  %3169 = vmatpush3.msra.mxu1 %v1281_v27 }
  0x6e   :  { %443 = vperm.xlu0 %3527, %v3797_v56   ;;  %3170 = vmatprep.subr.mxu1 %v1288_v41 }
  0x6f   :  { %3171 = vmatpush3.msra.mxu1 %v1288_v41  ;;  %v51_v41 = vld [vmem:[%s5385_s0 + $0xf0] sm:$0xff] }
  0x70   :  { %3172 = vmatprep.subr.mxu1 %v1295_v49 }
  0x71   :  { %3489 = vset.pattern.permute.xlu1 %v5398_v35  ;;  %3173 = vmatpush3.msra.mxu1 %v1295_v49 }
  0x72   :  { %398 = vperm.xlu1 %3489, %v3651_v22   ;;  %452 = vperm.xlu0 %3527, %v3818_v62  }
  0x73   :  { %3174 = vmatprep.subr.mxu1 %v1302_v54 }
  0x74   :  { %3175 = vmatpush3.msra.mxu1 %v1302_v54  ;;  %v46_v54 = vld [vmem:[%s5385_s0 + $0xc8] sm:$0xff] }
  0x75   :  { %3176 = vmatprep.subr.mxu1 %v1309_v58  ;;  %v4000_v55 = vadd.s32 %v46_v54, %v3595_v6 }
  0x76   :  { %3490 = vset.pattern.permute.xlu1 %v5390_v38  ;;  %461 = vperm.xlu0 %3527, %v3854_v15  }
  0x77   :  { %558 = vperm.xlu1 %3490, %v3651_v22   ;;  %3177 = vmatpush3.msra.mxu1 %v1309_v58  ;;  %5511 = vst [vmem:[#allocation19_spill] sm:$0xff] %v4000_v55 }
  0x78   :  { %3286 = vmatprep.subr.mxu1 %v3799_v57 }
  0x7a   :  { %3531 = vset.pattern.permute.xlu0 %v5388_v2 }
  0x7b   :  { %561 = vperm.xlu1 %3490, %v3648_v21   ;;  %86 = vperm.xlu0 %3531, %v3604_v9  }
  0x7f   :  { %3491 = vset.pattern.permute.xlu1 %v5392_v1  ;;  %89 = vperm.xlu0 %3531, %v3679_v30  }
  0x80   :  { %247 = vperm.xlu1 %3491, %v3662_v25  }
  0x83   :  { %v3914_v9 = vpop.permute.xlu1 %92  ;;  %98 = vperm.xlu0 %3531, %v3623_v14   ;;  %v3917_v21 = vpop.permute.xlu0 %214 }
  0x84   :  { %3492 = vset.pattern.permute.xlu1 %v5398_v35  ;;  %vm183_vm3 = vcmp.eq.s32.totalorder %v3586_v3, %v3914_v9 }
  0x85   :  { %404 = vperm.xlu1 %3492, %v3665_v26  }
  0x87   :  { %v3922_v60 = vpop.permute.xlu1 %95  ;;  %104 = vperm.xlu0 %3531, %v3637_v18   ;;  %v3925_v30 = vpop.permute.xlu0 %220 }
  0x88   :  { %vm311_vm1 = vcmp.eq.s32.totalorder %v3586_v3, %v3925_v30  ;;  %vm184_vm5 = vcmp.eq.s32.totalorder %v3586_v3, %v3922_v60 }
  0x89   :  { %3493 = vset.pattern.permute.xlu1 %v5390_v38  ;;  %vm343_vm6 = vmor %vm183_vm3, %vm311_vm1 }
  0x8a   :  { %564 = vperm.xlu1 %3493, %v3665_v26  }
  0x8b   :  { %v3929_v0 = vpop.permute.xlu1 %101  ;;  %110 = vperm.xlu0 %3531, %v3651_v22   ;;  %v3932_v14 = vpop.permute.xlu0 %226 }
  0x8c   :  { %vm186_vm13 = vcmp.eq.s32.totalorder %v3586_v3, %v3929_v0 }
  0x8e   :  { %567 = vperm.xlu1 %3493, %v3662_v25  }
  0x8f   :  { %v3935_v4 = vpop.permute.xlu1 %107  ;;  %116 = vperm.xlu0 %3531, %v3665_v26   ;;  %v3938_v8 = vpop.permute.xlu0 %232 }
  0x92   :  { %3494 = vset.pattern.permute.xlu1 %v5392_v1 }
  0x93   :  { %v3941_v18 = vpop.permute.xlu1 %113  ;;  %250 = vperm.xlu1 %3494, %v3713_v40   ;;  %122 = vperm.xlu0 %3531, %v3713_v40   ;;  %v3945_v10 = vpop.permute.xlu0 %238 }
  0x97   :  { %v3947_v22 = vpop.permute.xlu1 %119  ;;  %3495 = vset.pattern.permute.xlu1 %v5388_v2  ;;  %v3950_v25 = vpop.permute.xlu0 %244  ;;  %137 = vperm.xlu0 %3531, %v3783_v52  }
  0x98   :  { %125 = vperm.xlu1 %3495, %v3676_v29  }
  0x9b   :  { %v3954_v26 = vpop.permute.xlu0 %253  ;;  %140 = vperm.xlu0 %3531, %v3731_v44  }
  0x9c   :  { %v3957_v16 = vpop.permute.xlu1 %217  ;;  %3496 = vset.pattern.permute.xlu1 %v5398_v35 }
  0x9d   :  { %410 = vperm.xlu1 %3496, %v3713_v40  }
  0x9f   :  { %v3961_v17 = vpop.permute.xlu0 %256  ;;  %155 = vperm.xlu0 %3531, %v3797_v56  }
  0xa0   :  { %5507 = vst [vmem:[#allocation15_spill] sm:$0xff] %v3961_v17 }
  0xa1   :  { %413 = vperm.xlu1 %3496, %v3676_v29   ;;  %v3965_v23 = vpop.permute.xlu1 %374 }
  0xa3   :  { %v3967_v27 = vpop.permute.xlu0 %271  ;;  %158 = vperm.xlu0 %3531, %v3748_v48  }
  0xa4   :  { %5508 = vst [vmem:[#allocation16_spill] sm:$0xff] %v3967_v27 }
  0xa5   :  { %3497 = vset.pattern.permute.xlu1 %v5390_v38 }
  0xa6   :  { %573 = vperm.xlu1 %3497, %v3676_v29   ;;  %v3972_v28 = vpop.permute.xlu1 %534  ;;  %v3987_v29 = vadd.s32 %v51_v41, %v3595_v6 }
  0xa7   :  { %v3974_v33 = vpop.permute.xlu0 %274  ;;  %173 = vperm.xlu0 %3531, %v3854_v15  }
  0xa8   :  { %5509 = vst [vmem:[#allocation17_spill] sm:$0xff] %v3974_v33 }
  0xaa   :  { %3498 = vset.pattern.permute.xlu1 %v5388_v2  ;;  %v3978_v40 = vpop.permute.xlu1 %537 }
  0xab   :  { %128 = vperm.xlu1 %3498, %v3687_v32   ;;  %176 = vperm.xlu0 %3531, %v3987_v29  }
  0xac   :  { %v3984_v43 = vpop.permute.xlu0 %570 }
  0xaf   :  { %131 = vperm.xlu1 %3498, %v3722_v42   ;;  %v3991_v49 = vpop.permute.xlu1 %223  ;;  %3533 = vset.pattern.permute.xlu0 %v5392_v1 }
  0xb0   :  { %v3993_v51 = vpop.permute.xlu0 %579  ;;  %289 = vperm.xlu0 %3533, %v4000_v55   ;;  %vm312_vm2 = vcmp.eq.s32.totalorder %v3586_v3, %v3991_v49 }
  0xb1   :  { %5510 = vst [vmem:[#allocation18_spill] sm:$0xff] %v3993_v51  ;;  %vm344_vm9 = vmor %vm184_vm5, %vm312_vm2  ;;  %vm188_vm5 = vcmp.eq.s32.totalorder %v3586_v3, %v3935_v4 }
  0xb3   :  { %3499 = vset.pattern.permute.xlu1 %v5392_v1  ;;  %v37_v1 = vld [vmem:[%s5385_s0 + $0x80] sm:$0xff] }
  0xb4   :  { %259 = vperm.xlu1 %3499, %v3722_v42   ;;  %v381_v58 = vpop.permute.xlu1 %380  ;;  %v4004_v41 = vpop.permute.xlu0 %588  ;;  %292 = vperm.xlu0 %3533, %v3818_v62  }
  0xb5   :  { %5512 = vst [vmem:[#allocation20_spill] sm:$0xff] %v4004_v41  ;;  %vm471_vm4 = vcmp.eq.s32.totalorder %v3586_v3, %v381_v58 }
  0xb6   :  { %vm503_vm10 = vmor %vm343_vm6, %vm471_vm4 }
  0xb8   :  { %3500 = vset.pattern.permute.xlu1 %v5398_v35  ;;  %v4008_v2 = vpop.permute.xlu0 %597  ;;  %v69_v35 = vadd.s32 %v37_v1, %v3595_v6  ;;  %v5519_v1 = vmov 2  }
  0xb9   :  { %5513 = vst [vmem:[#allocation21_spill] sm:$0xff] %v4008_v2  ;;  %419 = vperm.xlu1 %3500, %v3722_v42   ;;  %v541_v38 = vpop.permute.xlu1 %540 }
  0xba   :  { %vm631_vm8 = vcmp.eq.s32.totalorder %v3586_v3, %v541_v38 }
  0xbb   :  { %vm4077_vm14 = vmor %vm503_vm10, %vm631_vm8  ;;  %vm757_vm10 = vcmask 359424  }
  0xbc   :  { %v4012_v54 = vpop.permute.xlu0 %606 }
  0xbd   :  { %5514 = vst [vmem:[#allocation22_spill] sm:$0xff] %v4012_v54  ;;  %3501 = vset.pattern.permute.xlu1 %v5515_v53  ;;  %v544_v45 = vpop.permute.xlu1 %543  ;;  %v5518_v54 = vmov 1  }
  0xbe   :  { %576 = vperm.xlu1 %3501, %v3687_v32   ;;  %vm632_vm0 = vcmp.eq.s32.totalorder %v3586_v3, %v544_v45 }
  0xc0   :  { %v4020_v31 = vpop.permute.xlu0 %615 }
  0xc1   :  { %5516 = vst [vmem:[#allocation23_spill] sm:$0xff] %v4020_v31 }
  0xc2   :  { %3502 = vset.pattern.permute.xlu1 %v5517_v19  ;;  %v230_v11 = vpop.permute.xlu1 %229 }
  0xc3   :  { %134 = vperm.xlu1 %3502, %v69_v35   ;;  %vm314_vm11 = vcmp.eq.s32.totalorder %v3586_v3, %v230_v11 }
  0xc4   :  { %vm346_vm1 = vmor %vm186_vm13, %vm314_vm11  ;;  %vm190_vm11 = vcmp.eq.s32.totalorder %v3586_v3, %v3941_v18 }
  0xc5   :  { %v4023_v42 = vpop.permute.xlu0 %377 }
  0xc7   :  { %3503 = vset.pattern.permute.xlu1 %v5518_v54  ;;  %v4026_v2 = vpop.permute.xlu1 %386 }
  0xc8   :  { %262 = vperm.xlu1 %3503, %v69_v35  }
  0xc9   :  { %v384_v33 = vpop.permute.xlu0 %383 }
  0xca   :  { %vm472_vm7 = vcmp.eq.s32.totalorder %v3586_v3, %v384_v33 }
  0xcb   :  { %vm504_vm12 = vmor %vm344_vm9, %vm472_vm7 }
  0xcc   :  { %265 = vperm.xlu1 %3503, %v3783_v52   ;;  %v4029_v27 = vpop.permute.xlu1 %546  ;;  %vm4084_vm3 = vmor %vm504_vm12, %vm632_vm0 }
  0xcd   :  { %v390_v32 = vpop.permute.xlu0 %389 }
  0xce   :  { %vm474_vm15 = vcmp.eq.s32.totalorder %v3586_v3, %v390_v32 }
  0xcf   :  { %vm506_vm6 = vmor %vm346_vm1, %vm474_vm15 }
  0xd0   :  { %3504 = vset.pattern.permute.xlu1 %v5519_v1  ;;  %v550_v31 = vpop.permute.xlu1 %549 }
  0xd1   :  { %422 = vperm.xlu1 %3504, %v69_v35   ;;  %v4032_v15 = vpop.permute.xlu0 %395  ;;  %vm634_vm4 = vcmp.eq.s32.totalorder %v3586_v3, %v550_v31  ;;  %v5432_v31 = vmov 0.0  }
  0xd2   :  { %vm476_vm8 = vcmp.eq.s32.totalorder %v3586_v3, %v4032_v15  ;;  %v4103_v60 = vsel %vm4077_vm14, 1.0, %v5432_v31  ;;  %vm4107_vm12 = vmor %vm506_vm6, %vm634_vm4  ;;  %vm309_vm14 = vcmp.eq.s32.totalorder %v3586_v3, %v3917_v21 }
  0xd5   :  { %3505 = vset.pattern.permute.xlu1 %v5515_v53  ;;  %v236_v41 = vpop.permute.xlu1 %235  ;;  %v4035_v50 = vpop.permute.xlu0 %401 }
  0xd6   :  { %582 = vperm.xlu1 %3505, %v69_v35   ;;  %vm316_vm2 = vcmp.eq.s32.totalorder %v3586_v3, %v236_v41  ;;  %vm478_vm15 = vcmp.eq.s32.totalorder %v3586_v3, %v4035_v50  ;;  %v4161_v41 = vsel %vm4107_vm12, 1.0, %v5432_v31  ;;  %vm192_vm12 = vcmp.eq.s32.totalorder %v3586_v3, %v3947_v22 }
  0xd7   :  { %vm348_vm9 = vmor %vm188_vm5, %vm316_vm2  ;;  %vm469_vm5 = vcmp.eq.s32.totalorder %v3586_v3, %v3965_v23  ;;  %5531 = vst [vmem:[#allocation25_spill] sm:$0xff] %v4161_v41 }
  0xd8   :  { %vm508_vm1 = vmor %vm348_vm9, %vm476_vm8  ;;  %vm470_vm8 = vcmp.eq.s32.totalorder %v3586_v3, %v4023_v42 }
  0xd9   :  { %v4037_v62 = vpop.permute.xlu0 %407 }
  0xda   :  { %585 = vperm.xlu1 %3505, %v3783_v52   ;;  %v4040_v51 = vpop.permute.xlu1 %392 }
  0xdd   :  { %v4042_v55 = vpop.permute.xlu0 %416 }
  0xde   :  { %5520 = vst [vmem:[#allocation24_spill] sm:$0xff] %v4042_v55  ;;  %3506 = vset.pattern.permute.xlu1 %v5518_v54 }
  0xdf   :  { %268 = vperm.xlu1 %3506, %v3731_v44   ;;  %v4046_v48 = vpop.permute.xlu1 %552 }
  0xe1   :  { %v4048_v17 = vpop.permute.xlu0 %425 }
  0xe3   :  { %3507 = vset.pattern.permute.xlu1 %v5517_v19  ;;  %v556_v63 = vpop.permute.xlu1 %555 }
  0xe4   :  { %143 = vperm.xlu1 %3507, %v3695_v34   ;;  %vm636_vm13 = vcmp.eq.s32.totalorder %v3586_v3, %v556_v63  ;;  %v765_v63 = vsel %vm757_vm10, %v4103_v60, 0 }
  0xe5   :  { %v4052_v35 = vpop.permute.xlu0 %434  ;;  %vm4124_vm2 = vmor %vm508_vm1, %vm636_vm13  ;;  %v4138_v33 = vsub.f32 %v765_v63, %v765_v63  ;;  %vm310_vm13 = vcmp.eq.s32.totalorder %v3586_v3, %v3957_v16  ;;  %v774_v63 = vsel %vm757_vm10, %v4161_v41, 0 }
  0xe7   :  { %v5418_v32 = vand.u32 4294901760, %v4138_v33 }
  0xe8   :  { %3508 = vset.pattern.permute.xlu1 %v5519_v1  ;;  %v242_v52 = vpop.permute.xlu1 %241 }
  0xe9   :  { %428 = vperm.xlu1 %3508, %v3731_v44   ;;  %v4060_v55 = vpop.permute.xlu0 %443  ;;  %vm318_vm7 = vcmp.eq.s32.totalorder %v3586_v3, %v242_v52  ;;  %v52_v52 = vld [vmem:[%s5385_s0 + $0xf8] sm:$0xff] }
  0xea   :  { %vm350_vm0 = vmor %vm190_vm11, %vm318_vm7  ;;  %vm629_vm7 = vcmp.eq.s32.totalorder %v3586_v3, %v3972_v28  ;;  %vm313_vm11 = vcmp.eq.s32.totalorder %v3586_v3, %v3932_v14  ;;  %v4184_v38 = vadd.s32 %v52_v52, %v3595_v6  ;;  %v4229_v14 = vsub.f32 %v4138_v33, %v5418_v32 }
  0xeb   :  { %vm4132_vm4 = vmor %vm350_vm0, %vm478_vm15 }
  0xec   :  { %307 = vperm.xlu0 %3533, %v4184_v38  }
  0xed   :  { %431 = vperm.xlu1 %3508, %v3695_v34   ;;  %v4071_v44 = vpop.permute.xlu1 %398  ;;  %v4073_v30 = vpop.permute.xlu0 %452 }
  0xf0   :  { %3537 = vset.pattern.permute.xlu0 %v5515_v53 }
  0xf1   :  { %3509 = vset.pattern.permute.xlu1 %v5515_v53  ;;  %v4090_v11 = vpop.permute.xlu0 %461  ;;  %624 = vperm.xlu0 %3537, %v3987_v29  }
  0xf2   :  { %591 = vperm.xlu1 %3509, %v3695_v34   ;;  %v4096_v45 = vpop.permute.xlu1 %558  ;;  %v4115_v34 = vsel %vm4084_vm3, 1.0, %v5432_v31 }
  0xf3   :  { %v768_v50 = vsel %vm757_vm10, %v4115_v34, 0 }
  0xf4   :  { %v4144_v58 = vsub.f32 %v768_v50, %v768_v50 }
  0xf6   :  { %3510 = vset.pattern.permute.xlu1 %v5517_v19  ;;  %v562_v15 = vpop.permute.xlu1 %561  ;;  %v87_v4 = vpop.permute.xlu0 %86  ;;  %v5419_v42 = vand.u32 4294901760, %v4144_v58 }
  0xf7   :  { %vm181_vm3 = vcmp.eq.s32.totalorder %v3586_v3, %v87_v4  ;;  %146 = vperm.xlu1 %3510, %v3704_v37   ;;  %vm638_vm1 = vcmp.eq.s32.totalorder %v3586_v3, %v562_v15  ;;  %v4204_v15 = vsel %vm4124_vm2, 1.0, %v5432_v31  ;;  %vm633_vm2 = vcmp.eq.s32.totalorder %v3586_v3, %v4029_v27 }
  0xf8   :  { %vm341_vm6 = vmor %vm181_vm3, %vm309_vm14  ;;  %vm315_vm14 = vcmp.eq.s32.totalorder %v3586_v3, %v3938_v8  ;;  %5534 = vst [vmem:[#allocation26_spill] sm:$0xff] %v4204_v15  ;;  %v4235_v27 = vsub.f32 %v774_v63, %v774_v63  ;;  %v780_v52 = vsel %vm757_vm10, %v4204_v15, 0 }
  0xf9   :  { %vm501_vm9 = vmor %vm341_vm6, %vm469_vm5  ;;  %vm317_vm5 = vcmp.eq.s32.totalorder %v3586_v3, %v3945_v10  ;;  %vm630_vm6 = vcmp.eq.s32.totalorder %v3586_v3, %v3978_v40 }
  0xfa   :  { %v90_v49 = vpop.permute.xlu0 %89  ;;  %vm661_vm15 = vmor %vm501_vm9, %vm629_vm7 }
  0xfb   :  { %vm182_vm0 = vcmp.eq.s32.totalorder %v3586_v3, %v90_v49  ;;  %149 = vperm.xlu1 %3510, %v3740_v46   ;;  %v248_v23 = vpop.permute.xlu1 %247  ;;  %v4156_v28 = vsel %vm661_vm15, 1.0, %v5432_v31 }
  0xfc   :  { %vm342_vm3 = vmor %vm182_vm0, %vm310_vm13  ;;  %3178 = vmatprep.mubr.msk.f32.mxu1 %vm757_vm10, %v4156_v28  ;;  %v759_v16 = vsel %vm757_vm10, %v4156_v28, 0  ;;  %vm320_vm15 = vcmp.eq.s32.totalorder %v3586_v3, %v248_v23 }
  0xfd   :  { %vm502_vm7 = vmor %vm342_vm3, %vm470_vm8  ;;  %v4180_v9 = vsub.f32 %v759_v16, %v759_v16 }
  0xfe   :  { %vm662_vm9 = vmor %vm502_vm7, %vm630_vm6  ;;  %v99_v40 = vpop.permute.xlu0 %98  ;;  %vm475_vm7 = vcmp.eq.s32.totalorder %v3586_v3, %v4040_v51 }
  0xff   :  { %vm4190_vm8 = vmor %vm4132_vm4, %vm638_vm1  ;;  %vm185_vm13 = vcmp.eq.s32.totalorder %v3586_v3, %v99_v40  ;;  %3512 = vset.pattern.permute.xlu1 %v5518_v54  ;;  %v4197_v4 = vsel %vm662_vm9, 1.0, %v5432_v31  ;;  %vm473_vm4 = vcmp.eq.s32.totalorder %v3586_v3, %v4026_v2  ;;  %v5420_v18 = vand.u32 4294901760, %v4180_v9 }
 0x100   :  { %vm345_vm0 = vmor %vm185_vm13, %vm313_vm11  ;;  %277 = vperm.xlu1 %3512, %v3740_v46   ;;  %v4213_v50 = vpop.permute.xlu1 %404  ;;  %v762_v21 = vsel %vm757_vm10, %v4197_v4, 0  ;;  %3179 = vmatmul.mubr.msk.f32.vlgmr.msra.gmra.mxu1 %vm757_vm10, %v4197_v4  ;;  %v4242_v40 = vsub.f32 %v4144_v58, %v5419_v42  ;;  %v43_v42 = vld [vmem:[%s5385_s0 + $0xb0] sm:$0xff]  ;;  %v4265_v23 = vsel %vm4190_vm8, 1.0, %v5432_v31  ;;  %vm635_vm8 = vcmp.eq.s32.totalorder %v3586_v3, %v4046_v48 }
 0x101   :  { %vm505_vm1 = vmor %vm345_vm0, %vm473_vm4  ;;  %v4222_v2 = vsub.f32 %v762_v21, %v762_v21  ;;  %3181 = vmatprep.mubr.msk.f32.mxu1 %vm757_vm10, %v4103_v60  ;;  %v932_v16 = vsub.f32 %v4180_v9, %v5420_v18  ;;  %3287 = vmatpush3.msra.mxu1 %v3799_v57  ;;  %5537 = vst [vmem:[#allocation27_spill] sm:$0xff] %v4265_v23  ;;  %v953_v21 = vand.u32 4294901760, %v4229_v14 }
 0x102   :  { %vm665_vm11 = vmor %vm505_vm1, %vm633_vm2  ;;  %v105_v49 = vpop.permute.xlu0 %104  ;;  %3288 = vmatprep.subr.mxu1 %v3813_v61  ;;  %v4290_v18 = vsub.f32 %v780_v52, %v780_v52  ;;  %v4293_v48 = vadd.s32 %v43_v42, %v3595_v6  ;;  %vm319_vm0 = vcmp.eq.s32.totalorder %v3586_v3, %v3950_v25  ;;  %vm477_vm2 = vcmp.eq.s32.totalorder %v3586_v3, %v4071_v44 }
 0x103   :  { %vm4250_vm3 = vmor %vm192_vm12, %vm320_vm15  ;;  %vm187_vm6 = vcmp.eq.s32.totalorder %v3586_v3, %v105_v49  ;;  %v4256_v63 = vsel %vm665_vm11, 1.0, %v5432_v31  ;;  %v5421_v32 = vand.u32 4294901760, %v4222_v2  ;;  %vm480_vm12 = vcmp.eq.s32.totalorder %v3586_v3, %v4037_v62  ;;  %3289 = vmatpush3.msra.mxu1 %v3813_v61 }
 0x104   :  { %vm347_vm9 = vmor %vm187_vm6, %vm315_vm14  ;;  %3513 = vset.pattern.permute.xlu1 %v5519_v1  ;;  %3182 = vmatmul.mubr.msk.f32.gmra.mxu1 %vm757_vm10, %v4115_v34  ;;  %v933_v22 = vand.u32 4294901760, %v932_v16  ;;  %v771_v0 = vsel %vm757_vm10, %v4256_v63, 0  ;;  %vm637_vm11 = vcmp.eq.s32.totalorder %v3586_v3, %v4096_v45 }
 0x105   :  { %vm507_vm13 = vmor %vm347_vm9, %vm475_vm7  ;;  %437 = vperm.xlu1 %3513, %v3740_v46   ;;  %v565_v51 = vpop.permute.xlu1 %564  ;;  %v4283_v49 = vsub.f32 %v771_v0, %v771_v0  ;;  %3184 = vmatprep.mubr.msk.f32.mxu1 %vm757_vm10, %v4256_v63  ;;  %v942_v8 = vsub.f32 %v4222_v2, %v5421_v32  ;;  %v786_v46 = vsel %vm757_vm10, %v4265_v23, 0  ;;  %v5424_v0 = vand.u32 4294901760, %v4235_v27 }
 0x106   :  { %vm667_vm14 = vmor %vm507_vm13, %vm635_vm8  ;;  %3118 = vmatprep.mubr.f32.mxu0 %v933_v22  ;;  %v111_v16 = vpop.permute.xlu0 %110  ;;  %3290 = vmatprep.subr.mxu1 %v3832_v7  ;;  %v4341_v14 = vsub.f32 %v786_v46, %v786_v46  ;;  %vm479_vm9 = vcmp.eq.s32.totalorder %v3586_v3, %v4213_v50  ;;  %vm639_vm13 = vcmp.eq.s32.totalorder %v3586_v3, %v565_v51 }
 0x107   :  { %vm189_vm4 = vcmp.eq.s32.totalorder %v3586_v3, %v111_v16  ;;  %vm4305_vm15 = vmor %vm4250_vm3, %vm480_vm12  ;;  %v943_v42 = vand.u32 4294901760, %v942_v8  ;;  %v4310_v22 = vsel %vm667_vm14, 1.0, %v5432_v31  ;;  %v5425_v32 = vand.u32 4294901760, %v4283_v49  ;;  %3291 = vmatpush3.msra.mxu1 %v3832_v7 }
 0x108   :  { %5540 = vst [vmem:[#allocation28_spill] sm:$0xff] %v4310_v22  ;;  %vm349_vm1 = vmor %vm189_vm4, %vm317_vm5  ;;  %3185 = vmatmul.mubr.msk.f32.gmra.mxu1 %vm757_vm10, %v4161_v41  ;;  %v777_v62 = vsel %vm757_vm10, %v4310_v22, 0  ;;  %v963_v8 = vand.u32 4294901760, %v4242_v40  ;;  %v5423_v40 = vand.u32 4294901760, %v4290_v18  ;;  %3292 = vmatprep.subr.mxu1 %v3848_v13 }
 0x109   :  { %vm509_vm3 = vmor %vm349_vm1, %vm477_vm2  ;;  %3514 = vset.pattern.permute.xlu1 %v5515_v53  ;;  %v568_v44 = vpop.permute.xlu1 %567  ;;  %3119 = vmatmul.mubr.f32.vlgmr.msra.gmra.mxu0 %v943_v42  ;;  %v4331_v10 = vsub.f32 %v777_v62, %v777_v62  ;;  %v972_v16 = vsub.f32 %v4283_v49, %v5425_v32  ;;  %v982_v42 = vsub.f32 %v4235_v27, %v5424_v0 }
 0x10a   :  { %vm669_vm5 = vmor %vm509_vm3, %vm637_vm11  ;;  %vm640_vm6 = vcmp.eq.s32.totalorder %v3586_v3, %v568_v44  ;;  %3187 = vmatprep.mubr.msk.f32.mxu1 %vm757_vm10, %v4310_v22  ;;  %594 = vperm.xlu1 %3514, %v3704_v37   ;;  %v117_v45 = vpop.permute.xlu0 %116  ;;  %vm641_vm2 = vcmp.eq.s32.totalorder %v3586_v3, %v3984_v43 }
 0x10b   :  { %vm672_vm7 = vmor %vm4305_vm15, %vm640_vm6  ;;  %vm191_vm12 = vcmp.eq.s32.totalorder %v3586_v3, %v117_v45  ;;  %3121 = vmatprep.mubr.f32.mxu0 %v953_v21  ;;  %v4351_v62 = vsel %vm669_vm5, 1.0, %v5432_v31  ;;  %v973_v44 = vand.u32 4294901760, %v972_v16  ;;  %v5422_v37 = vand.u32 4294901760, %v4331_v10  ;;  %3227 = vmatpush3.msra.mxu0 %v3806_v59 }
 0x10c   :  { %5541 = vst [vmem:[#allocation29_spill] sm:$0xff] %v4351_v62  ;;  %vm351_vm8 = vmor %vm191_vm12, %vm319_vm0  ;;  %3188 = vmatmul.mubr.msk.f32.gmra.mxu1 %vm757_vm10, %v4204_v15  ;;  %v783_v46 = vsel %vm757_vm10, %v4351_v62, 0  ;;  %v4365_v52 = vsel %vm672_vm7, 1.0, %v5432_v31  ;;  %3228 = vmatprep.subr.mxu0 %v3830_v5  ;;  %v983_v51 = vand.u32 4294901760, %v982_v42  ;;  %vm322_vm6 = vcmp.eq.s32.totalorder %v3586_v3, %v3954_v26 }
 0x10d   :  { %5542 = vst [vmem:[#allocation30_spill] sm:$0xff] %v4365_v52  ;;  %vm511_vm14 = vmor %vm351_vm8, %vm479_vm9  ;;  %3122 = vmatmul.mubr.f32.gmra.mxu0 %v963_v8  ;;  %v4369_v59 = vsub.f32 %v783_v46, %v783_v46  ;;  %3190 = vmatprep.mubr.msk.f32.mxu1 %vm757_vm10, %v4351_v62  ;;  %v992_v25 = vsub.f32 %v4331_v10, %v5422_v37  ;;  %v792_v50 = vsel %vm757_vm10, %v4365_v52, 0  ;;  %v5426_v37 = vand.u32 4294901760, %v4341_v14 }
 0x10e   :  { %vm671_vm4 = vmor %vm511_vm14, %vm639_vm13  ;;  %3515 = vset.pattern.permute.xlu1 %v5517_v19  ;;  %v251_v21 = vpop.permute.xlu1 %250  ;;  %3124 = vmatprep.mubr.f32.mxu0 %v973_v44  ;;  %v1002_v8 = vsub.f32 %v4290_v18, %v5423_v40  ;;  %v4386_v46 = vsub.f32 %v792_v50, %v792_v50 }
 0x10f   :  { %152 = vperm.xlu1 %3515, %v4293_v48   ;;  %v4384_v16 = vsel %vm671_vm4, 1.0, %v5432_v31  ;;  %v993_v45 = vand.u32 4294901760, %v992_v25  ;;  %3229 = vmatpush3.msra.mxu0 %v3830_v5  ;;  %v5431_v44 = vand.u32 4294901760, %v4369_v59  ;;  %v123_v25 = vpop.permute.xlu0 %122  ;;  %vm321_vm15 = vcmp.eq.s32.totalorder %v3586_v3, %v251_v21 }
 0x110   :  { %5543 = vst [vmem:[#allocation31_spill] sm:$0xff] %v4384_v16  ;;  %3191 = vmatmul.mubr.msk.f32.gmra.mxu1 %vm757_vm10, %v4265_v23  ;;  %v789_v42 = vsel %vm757_vm10, %v4384_v16, 0  ;;  %3230 = vmatprep.subr.mxu0 %v3846_v12  ;;  %v1003_v0 = vand.u32 4294901760, %v1002_v8  ;;  %v5429_v32 = vand.u32 4294901760, %v4386_v46  ;;  %vm193_vm0 = vcmp.eq.s32.totalorder %v3586_v3, %v123_v25  ;;  %v5545_v25 = vld [vmem:[#allocation8_spill] sm:$0xff] }
 0x111   :  { %3125 = vmatmul.mubr.f32.gmra.mxu0 %v983_v51  ;;  %v4396_v40 = vsub.f32 %v789_v42, %v789_v42  ;;  %3193 = vmatprep.mubr.msk.f32.mxu1 %vm757_vm10, %v4384_v16  ;;  %v1012_v5 = vsub.f32 %v4369_v59, %v5431_v44  ;;  %v1022_v51 = vsub.f32 %v4341_v14, %v5426_v37  ;;  %vm353_vm1 = vmor %vm193_vm0, %vm321_vm15 }
 0x112   :  { %3127 = vmatprep.mubr.f32.mxu0 %v993_v45  ;;  %3231 = vmatpush3.msra.mxu0 %v3846_v12 }
 0x113   :  { %3516 = vset.pattern.permute.xlu1 %v5518_v54  ;;  %v126_v50 = vpop.permute.xlu1 %125  ;;  %v5430_v42 = vand.u32 4294901760, %v4396_v40  ;;  %v1013_v12 = vand.u32 4294901760, %v1012_v5  ;;  %3232 = vmatprep.subr.mxu0 %v3862_v20  ;;  %v1023_v45 = vand.u32 4294901760, %v1022_v51  ;;  %v1042_v5 = vsub.f32 %v4386_v46, %v5429_v32 }
 0x114   :  { %280 = vperm.xlu1 %3516, %v4293_v48   ;;  %3194 = vmatmul.mubr.msk.f32.gmra.mxu1 %vm757_vm10, %v4365_v52  ;;  %vm194_vm7 = vcmp.eq.s32.totalorder %v3586_v3, %v126_v50 }
 0x115   :  { %3128 = vmatmul.mubr.f32.gmra.mxu0 %v1003_v0  ;;  %v1032_v8 = vsub.f32 %v4396_v40, %v5430_v42  ;;  %3293 = vmatpush3.msra.mxu1 %v3848_v13  ;;  %vm354_vm9 = vmor %vm194_vm7, %vm322_vm6  ;;  %v5557_v42 = vld [vmem:[#allocation6_spill] sm:$0xff] }
 0x116   :  { %3130 = vmatprep.mubr.f32.mxu0 %v1013_v12  ;;  %3233 = vmatpush3.msra.mxu0 %v3862_v20  ;;  %v1043_v20 = vand.u32 4294901760, %v1042_v5  ;;  %v5548_v5 = vld [vmem:[#allocation24_spill] sm:$0xff] }
 0x117   :  { %v1033_v37 = vand.u32 4294901760, %v1032_v8  ;;  %3234 = vmatprep.subr.mxu0 %v3883_v36  ;;  %3294 = vmatprep.subr.mxu1 %v3868_v24  ;;  %v5547_v8 = vld [vmem:[#allocation15_spill] sm:$0xff]  ;;  %vm483_vm15 = vcmp.eq.s32.totalorder %v3586_v3, %v5548_v5 }
 0x118   :  { %283 = vperm.xlu1 %3516, %v3797_v56   ;;  %v411_v0 = vpop.permute.xlu1 %410  ;;  %3235 = vmatpush3.msra.mxu0 %v3883_v36  ;;  %vm323_vm4 = vcmp.eq.s32.totalorder %v3586_v3, %v5547_v8  ;;  %v5552_v8 = vld [vmem:[#allocation19_spill] sm:$0xff] }
 0x119   :  { %vm481_vm11 = vcmp.eq.s32.totalorder %v3586_v3, %v411_v0  ;;  %3131 = vmatmul.mubr.f32.gmra.mxu0 %v1023_v45  ;;  %3295 = vmatpush3.msra.mxu1 %v3868_v24 }
 0x11a   :  { %vm513_vm3 = vmor %vm353_vm1, %vm481_vm11  ;;  %3133 = vmatprep.mubr.f32.mxu0 %v1033_v37  ;;  %3236 = vmatprep.subr.mxu0 %v3894_v47 }
 0x11b   :  { %vm673_vm5 = vmor %vm513_vm3, %vm641_vm2  ;;  %3296 = vmatprep.subr.mxu1 %v3885_v39  ;;  %3237 = vmatpush3.msra.mxu0 %v3894_v47 }
 0x11c   :  { %3517 = vset.pattern.permute.xlu1 %v5519_v1  ;;  %v414_v43 = vpop.permute.xlu1 %413  ;;  %v4437_v21 = vsel %vm673_vm5, 1.0, %v5432_v31  ;;  %3297 = vmatpush3.msra.mxu1 %v3885_v39 }
 0x11d   :  { %5544 = vst [vmem:[#allocation32_spill] sm:$0xff] %v4437_v21  ;;  %440 = vperm.xlu1 %3517, %v4293_v48   ;;  %3134 = vmatmul.mubr.f32.gmra.mxu0 %v1043_v20  ;;  %v795_v36 = vsel %vm757_vm10, %v4437_v21, 0  ;;  %vm482_vm12 = vcmp.eq.s32.totalorder %v3586_v3, %v414_v43 }
 0x11e   :  { %v4446_v37 = vsub.f32 %v795_v36, %v795_v36  ;;  %3196 = vmatprep.mubr.msk.f32.mxu1 %vm757_vm10, %v4437_v21  ;;  %3346 = vmatprep.subr.mxu0 %v5545_v25  ;;  %vm514_vm8 = vmor %vm354_vm9, %vm482_vm12 }
 0x11f   :  { %3406 = vmatprep.subr.mxu1 %v3799_v57 }
 0x120   :  { %v5428_v51 = vand.u32 4294901760, %v4446_v37 }
 0x121   :  { %3518 = vset.pattern.permute.xlu1 %v5515_v53  ;;  %v574_v26 = vpop.permute.xlu1 %573 }
 0x122   :  { %vm642_vm13 = vcmp.eq.s32.totalorder %v3586_v3, %v574_v26  ;;  %600 = vperm.xlu1 %3518, %v4293_v48   ;;  %v1052_v47 = vsub.f32 %v4446_v37, %v5428_v51 }
 0x123   :  { %vm674_vm14 = vmor %vm514_vm8, %vm642_vm13 }
 0x124   :  { %v4463_v50 = vsel %vm674_vm14, 1.0, %v5432_v31  ;;  %v1053_v12 = vand.u32 4294901760, %v1052_v47  ;;  %v5551_v47 = vld [vmem:[#allocation5_spill] sm:$0xff] }
 0x125   :  { %5546 = vst [vmem:[#allocation8_spill] sm:$0xff] %v4463_v50  ;;  %v798_v45 = vsel %vm757_vm10, %v4463_v50, 0  ;;  %3197 = vmatmul.mubr.msk.f32.gmra.mxu1 %vm757_vm10, %v4463_v50 }
 0x126   :  { %v4473_v48 = vsub.f32 %v798_v45, %v798_v45  ;;  %603 = vperm.xlu1 %3518, %v3797_v56   ;;  %v129_v0 = vpop.permute.xlu1 %128  ;;  %3136 = vmatprep.mubr.f32.mxu0 %v1053_v12  ;;  %v5553_v45 = vld [vmem:[#allocation18_spill] sm:$0xff] }
 0x127   :  { %vm195_vm0 = vcmp.eq.s32.totalorder %v3586_v3, %v129_v0  ;;  %vm644_vm3 = vcmp.eq.s32.totalorder %v3586_v3, %v5553_v45 }
 0x128   :  { %vm355_vm2 = vmor %vm195_vm0, %vm323_vm4  ;;  %v5427_v20 = vand.u32 4294901760, %v4473_v48 }
 0x129   :  { %vm4478_vm1 = vmor %vm355_vm2, %vm483_vm15 }
 0x12a   :  { %3519 = vset.pattern.permute.xlu1 %v5518_v54  ;;  %v132_v36 = vpop.permute.xlu1 %131  ;;  %v1062_v26 = vsub.f32 %v4473_v48, %v5427_v20 }
 0x12b   :  { %286 = vperm.xlu1 %3519, %v5551_v47   ;;  %vm196_vm5 = vcmp.eq.s32.totalorder %v3586_v3, %v132_v36 }
 0x12c   :  { %v1063_v56 = vand.u32 4294901760, %v1062_v26 }
 0x12e   :  { %3137 = vmatmul.mubr.f32.gmra.mxu0 %v1063_v56 }
 0x12f   :  { %3520 = vset.pattern.permute.xlu1 %v5517_v19  ;;  %v260_v12 = vpop.permute.xlu1 %259 }
 0x130   :  { %161 = vperm.xlu1 %3520, %v5552_v8   ;;  %vm324_vm11 = vcmp.eq.s32.totalorder %v3586_v3, %v260_v12 }
 0x131   :  { %vm356_vm6 = vmor %vm196_vm5, %vm324_vm11 }
 0x134   :  { %3521 = vset.pattern.permute.xlu1 %v5519_v1  ;;  %v420_v5 = vpop.permute.xlu1 %419 }
 0x135   :  { %vm484_vm7 = vcmp.eq.s32.totalorder %v3586_v3, %v420_v5  ;;  %446 = vperm.xlu1 %3521, %v5551_v47  }
 0x136   :  { %vm516_vm12 = vmor %vm356_vm6, %vm484_vm7  ;;  %vm486_vm6 = vcmp.eq.s32.totalorder %v3586_v3, %v4048_v17 }
 0x137   :  { %vm676_vm9 = vmor %vm516_vm12, %vm644_vm3 }
 0x138   :  { %v4497_v0 = vsel %vm676_vm9, 1.0, %v5432_v31 }
 0x139   :  { %5554 = vst [vmem:[#allocation15_spill] sm:$0xff] %v4497_v0  ;;  %449 = vperm.xlu1 %3521, %v5552_v8   ;;  %v577_v26 = vpop.permute.xlu1 %576  ;;  %v804_v56 = vsel %vm757_vm10, %v4497_v0, 0 }
 0x13a   :  { %vm643_vm8 = vcmp.eq.s32.totalorder %v3586_v3, %v577_v26  ;;  %v4503_v36 = vsub.f32 %v804_v56, %v804_v56 }
 0x13b   :  { %vm675_vm13 = vmor %vm4478_vm1, %vm643_vm8 }
 0x13c   :  { %v4508_v47 = vsel %vm675_vm13, 1.0, %v5432_v31  ;;  %v5434_v45 = vand.u32 4294901760, %v4503_v36  ;;  %v138_v31 = vpop.permute.xlu0 %137 }
 0x13d   :  { %5555 = vst [vmem:[#allocation24_spill] sm:$0xff] %v4508_v47  ;;  %v801_v12 = vsel %vm757_vm10, %v4508_v47, 0  ;;  %3522 = vset.pattern.permute.xlu1 %v5515_v53  ;;  %3199 = vmatprep.mubr.msk.f32.mxu1 %vm757_vm10, %v4508_v47  ;;  %vm198_vm15 = vcmp.eq.s32.totalorder %v3586_v3, %v138_v31 }
 0x13e   :  { %v4516_v5 = vsub.f32 %v801_v12, %v801_v12  ;;  %609 = vperm.xlu1 %3522, %v5552_v8   ;;  %v135_v26 = vpop.permute.xlu1 %134  ;;  %3200 = vmatmul.mubr.msk.f32.gmra.mxu1 %vm757_vm10, %v4497_v0  ;;  %v1082_v56 = vsub.f32 %v4503_v36, %v5434_v45  ;;  %v5556_v12 = vld [vmem:[#allocation7_spill] sm:$0xff] }
 0x13f   :  { %vm197_vm0 = vcmp.eq.s32.totalorder %v3586_v3, %v135_v26 }
 0x140   :  { %v5435_v43 = vand.u32 4294901760, %v4516_v5  ;;  %v1083_v32 = vand.u32 4294901760, %v1082_v56 }
 0x142   :  { %3523 = vset.pattern.permute.xlu1 %v5517_v19  ;;  %v1072_v20 = vsub.f32 %v4516_v5, %v5435_v43  ;;  %v141_v43 = vpop.permute.xlu0 %140 }
 0x143   :  { %164 = vperm.xlu1 %3523, %v5556_v12   ;;  %v263_v51 = vpop.permute.xlu1 %262 }
 0x144   :  { %v1073_v8 = vand.u32 4294901760, %v1072_v20  ;;  %vm325_vm14 = vcmp.eq.s32.totalorder %v3586_v3, %v263_v51  ;;  %v49_v51 = vld [vmem:[%s5385_s0 + $0xe0] sm:$0xff]  ;;  %s3566_s0 = smov [#allocation2]  }
 0x145   :  { %vm357_vm1 = vmor %vm197_vm0, %vm325_vm14  ;;  %v81_v17 = vadd.s32 %v49_v51, %v3595_v6  ;;  %vm199_vm14 = vcmp.eq.s32.totalorder %v3586_v3, %v141_v43  ;;  %s2739_s28 = sshll.u32 %s3566_s0, 4  ;;  %s2740_s28 = int_to_ptr.vmem [resolvable:$true] %s2739_s28 }
 0x146   :  { %3139 = vmatprep.mubr.f32.mxu0 %v1073_v8  ;;  %s3539_s29 = scalar_lea.vmem %s2740_s28, 4096  ;;  %p3544_p1 = scmp.lt.s32.totalorder %s2740_s28, %s2740_s28 }
 0x147   :  { %167 = vperm.xlu1 %3523, %v5557_v42   ;;  %v266_v44 = vpop.permute.xlu1 %265  ;;  %3140 = vmatmul.mubr.f32.gmra.mxu0 %v1083_v32  ;;  %p3540_p0 = scmp.ne.s32.totalorder %s2740_s28, %s3539_s29  ;;  %p3545_p2 = scmp.lt.s32.totalorder %s3539_s29, %s3539_s29 }
 0x148   :  { %vm326_vm4 = vcmp.eq.s32.totalorder %v3586_v3, %v266_v44  ;;  %v5558_v44 = vmov 0.0  }
 0x149   :  { %vm358_vm11 = vmor %vm198_vm15, %vm326_vm4  ;;  %p3546_p3 = por %p3545_p2, %p3544_p1 }
 0x14a   :  { %vm518_vm12 = vmor %vm358_vm11, %vm486_vm6 }
 0x14b   :  { %3524 = vset.pattern.permute.xlu1 %v5518_v54  ;;  %p3547_p4 = pnand %p3546_p3, %p3540_p0 }
 0x14c   :  { %295 = vperm.xlu1 %3524, %v5557_v42   ;;  %v423_v45 = vpop.permute.xlu1 %422 }
 0x14d   :  { %vm485_vm2 = vcmp.eq.s32.totalorder %v3586_v3, %v423_v45 }
 0x14e   :  { %vm517_vm3 = vmor %vm357_vm1, %vm485_vm2 }
 0x150   :  { %3525 = vset.pattern.permute.xlu1 %v5519_v1 }
 0x151   :  { %455 = vperm.xlu1 %3525, %v5557_v42   ;;  %v583_v32 = vpop.permute.xlu1 %582 }
 0x152   :  { %vm645_vm5 = vcmp.eq.s32.totalorder %v3586_v3, %v583_v32 }
 0x153   :  { %vm677_vm7 = vmor %vm517_vm3, %vm645_vm5 }
 0x154   :  { %v4544_v31 = vsel %vm677_vm7, 1.0, %v5558_v44 }
 0x155   :  { %5559 = vst [vmem:[#allocation5_spill] sm:$0xff] %v4544_v31  ;;  %v807_v20 = vsel %vm757_vm10, %v4544_v31, 0  ;;  %3526 = vset.pattern.permute.xlu1 %v5515_v53  ;;  %v586_v42 = vpop.permute.xlu1 %585  ;;  %3202 = vmatprep.mubr.msk.f32.mxu1 %vm757_vm10, %v4544_v31 }
 0x156   :  { %v4554_v45 = vsub.f32 %v807_v20, %v807_v20  ;;  %vm646_vm9 = vcmp.eq.s32.totalorder %v3586_v3, %v586_v42  ;;  %612 = vperm.xlu1 %3526, %v5556_v12  }
 0x157   :  { %vm678_vm8 = vmor %vm518_vm12, %vm646_vm9 }
 0x158   :  { %v4560_v26 = vsel %vm678_vm8, 1.0, %v5558_v44  ;;  %v5438_v56 = vand.u32 4294901760, %v4554_v45  ;;  %vm489_vm8 = vcmp.eq.s32.totalorder %v3586_v3, %v4052_v35 }
 0x159   :  { %5560 = vst [vmem:[#allocation19_spill] sm:$0xff] %v4560_v26  ;;  %v810_v8 = vsel %vm757_vm10, %v4560_v26, 0  ;;  %3203 = vmatmul.mubr.msk.f32.gmra.mxu1 %vm757_vm10, %v4560_v26 }
 0x15a   :  { %v4567_v32 = vsub.f32 %v810_v8, %v810_v8  ;;  %3528 = vset.pattern.permute.xlu1 %v5517_v19  ;;  %v269_v20 = vpop.permute.xlu1 %268  ;;  %v1092_v6 = vsub.f32 %v4554_v45, %v5438_v56  ;;  %v5561_v56 = vld [vmem:[#allocation20_spill] sm:$0xff] }
 0x15b   :  { %170 = vperm.xlu1 %3528, %v81_v17   ;;  %vm327_vm13 = vcmp.eq.s32.totalorder %v3586_v3, %v269_v20  ;;  %vm647_vm4 = vcmp.eq.s32.totalorder %v3586_v3, %v5561_v56  ;;  %v5564_v56 = vld [vmem:[#allocation16_spill] sm:$0xff] }
 0x15c   :  { %v1093_v12 = vand.u32 4294901760, %v1092_v6  ;;  %v5439_v51 = vand.u32 4294901760, %v4567_v32  ;;  %v5562_v6 = vld [vmem:[#allocation10_spill] sm:$0xff]  ;;  %vm359_vm15 = vmor %vm199_vm14, %vm327_vm13  ;;  %vm328_vm5 = vcmp.eq.s32.totalorder %v3586_v3, %v5564_v56 }
 0x15e   :  { %3142 = vmatprep.mubr.f32.mxu0 %v1093_v12  ;;  %v1102_v42 = vsub.f32 %v4567_v32, %v5439_v51 }
 0x15f   :  { %3529 = vset.pattern.permute.xlu1 %v5518_v54  ;;  %v144_v8 = vpop.permute.xlu1 %143 }
 0x160   :  { %298 = vperm.xlu1 %3529, %v81_v17   ;;  %v1103_v26 = vand.u32 4294901760, %v1102_v42  ;;  %vm200_vm11 = vcmp.eq.s32.totalorder %v3586_v3, %v144_v8 }
 0x161   :  { %vm360_vm6 = vmor %vm200_vm11, %vm328_vm5 }
 0x162   :  { %3143 = vmatmul.mubr.f32.gmra.mxu0 %v1103_v26 }
 0x164   :  { %301 = vperm.xlu1 %3529, %v5562_v6   ;;  %v429_v12 = vpop.permute.xlu1 %428 }
 0x165   :  { %vm487_vm0 = vcmp.eq.s32.totalorder %v3586_v3, %v429_v12 }
 0x166   :  { %vm519_vm2 = vmor %vm359_vm15, %vm487_vm0 }
 0x167   :  { %vm679_vm1 = vmor %vm519_vm2, %vm647_vm4 }
 0x168   :  { %3530 = vset.pattern.permute.xlu1 %v5519_v1  ;;  %v432_v51 = vpop.permute.xlu1 %431  ;;  %v4586_v42 = vsel %vm679_vm1, 1.0, %v5558_v44 }
 0x169   :  { %5563 = vst [vmem:[#allocation18_spill] sm:$0xff] %v4586_v42  ;;  %458 = vperm.xlu1 %3530, %v81_v17   ;;  %v813_v43 = vsel %vm757_vm10, %v4586_v42, 0  ;;  %3205 = vmatprep.mubr.msk.f32.mxu1 %vm757_vm10, %v4586_v42  ;;  %vm488_vm3 = vcmp.eq.s32.totalorder %v3586_v3, %v432_v51 }
 0x16a   :  { %v4593_v26 = vsub.f32 %v813_v43, %v813_v43  ;;  %vm520_vm7 = vmor %vm360_vm6, %vm488_vm3 }
 0x16c   :  { %v5440_v20 = vand.u32 4294901760, %v4593_v26 }
 0x16d   :  { %3532 = vset.pattern.permute.xlu1 %v5515_v53  ;;  %v592_v12 = vpop.permute.xlu1 %591 }
 0x16e   :  { %vm648_vm12 = vcmp.eq.s32.totalorder %v3586_v3, %v592_v12  ;;  %618 = vperm.xlu1 %3532, %v81_v17   ;;  %v1112_v8 = vsub.f32 %v4593_v26, %v5440_v20  ;;  %v5566_v20 = vld [vmem:[#allocation17_spill] sm:$0xff] }
 0x16f   :  { %vm680_vm9 = vmor %vm520_vm7, %vm648_vm12  ;;  %vm329_vm13 = vcmp.eq.s32.totalorder %v3586_v3, %v5566_v20 }
 0x170   :  { %v4605_v51 = vsel %vm680_vm9, 1.0, %v5558_v44  ;;  %v1113_v43 = vand.u32 4294901760, %v1112_v8 }
 0x171   :  { %5565 = vst [vmem:[#allocation7_spill] sm:$0xff] %v4605_v51  ;;  %v816_v56 = vsel %vm757_vm10, %v4605_v51, 0  ;;  %3206 = vmatmul.mubr.msk.f32.gmra.mxu1 %vm757_vm10, %v4605_v51 }
 0x172   :  { %v4613_v12 = vsub.f32 %v816_v56, %v816_v56  ;;  %621 = vperm.xlu1 %3532, %v5562_v6   ;;  %v147_v17 = vpop.permute.xlu1 %146  ;;  %3145 = vmatprep.mubr.f32.mxu0 %v1113_v43  ;;  %v5569_v56 = vld [vmem:[#allocation21_spill] sm:$0xff] }
 0x173   :  { %vm201_vm14 = vcmp.eq.s32.totalorder %v3586_v3, %v147_v17  ;;  %vm650_vm3 = vcmp.eq.s32.totalorder %v3586_v3, %v5569_v56 }
 0x174   :  { %vm361_vm4 = vmor %vm201_vm14, %vm329_vm13  ;;  %v5443_v8 = vand.u32 4294901760, %v4613_v12 }
 0x175   :  { %vm4620_vm15 = vmor %vm361_vm4, %vm489_vm8 }
 0x176   :  { %3534 = vset.pattern.permute.xlu1 %v5518_v54  ;;  %v150_v35 = vpop.permute.xlu1 %149  ;;  %v1122_v6 = vsub.f32 %v4613_v12, %v5443_v8 }
 0x177   :  { %304 = vperm.xlu1 %3534, %v3987_v29   ;;  %vm202_vm2 = vcmp.eq.s32.totalorder %v3586_v3, %v150_v35 }
 0x178   :  { %v1123_v43 = vand.u32 4294901760, %v1122_v6 }
 0x17a   :  { %3146 = vmatmul.mubr.f32.gmra.mxu0 %v1123_v43 }
 0x17b   :  { %3535 = vset.pattern.permute.xlu1 %v5517_v19  ;;  %v278_v20 = vpop.permute.xlu1 %277 }
 0x17c   :  { %179 = vperm.xlu1 %3535, %v4184_v38   ;;  %vm330_vm0 = vcmp.eq.s32.totalorder %v3586_v3, %v278_v20 }
 0x17d   :  { %vm362_vm1 = vmor %vm202_vm2, %vm330_vm0 }
 0x180   :  { %3536 = vset.pattern.permute.xlu1 %v5519_v1  ;;  %v438_v54 = vpop.permute.xlu1 %437 }
 0x181   :  { %vm490_vm11 = vcmp.eq.s32.totalorder %v3586_v3, %v438_v54  ;;  %464 = vperm.xlu1 %3536, %v3987_v29  }
 0x182   :  { %vm522_vm5 = vmor %vm362_vm1, %vm490_vm11 }
 0x183   :  { %vm682_vm6 = vmor %vm522_vm5, %vm650_vm3  ;;  %vm492_vm3 = vcmp.eq.s32.totalorder %v3586_v3, %v4060_v55 }
 0x184   :  { %v4639_v19 = vsel %vm682_vm6, 1.0, %v5558_v44 }
 0x185   :  { %5570 = vst [vmem:[#allocation6_spill] sm:$0xff] %v4639_v19  ;;  %467 = vperm.xlu1 %3536, %v4184_v38   ;;  %v595_v17 = vpop.permute.xlu1 %594  ;;  %v822_v1 = vsel %vm757_vm10, %v4639_v19, 0 }
 0x186   :  { %vm649_vm7 = vcmp.eq.s32.totalorder %v3586_v3, %v595_v17  ;;  %v4645_v35 = vsub.f32 %v822_v1, %v822_v1 }
 0x187   :  { %vm681_vm12 = vmor %vm4620_vm15, %vm649_vm7 }
 0x188   :  { %v4650_v29 = vsel %vm681_vm12, 1.0, %v5558_v44  ;;  %v5446_v43 = vand.u32 4294901760, %v4645_v35 }
 0x189   :  { %5571 = vst [vmem:[#allocation20_spill] sm:$0xff] %v4650_v29  ;;  %v819_v6 = vsel %vm757_vm10, %v4650_v29, 0  ;;  %3538 = vset.pattern.permute.xlu1 %v5515_v53  ;;  %3208 = vmatprep.mubr.msk.f32.mxu1 %vm757_vm10, %v4650_v29 }
 0x18a   :  { %v4658_v20 = vsub.f32 %v819_v6, %v819_v6  ;;  %627 = vperm.xlu1 %3538, %v4184_v38   ;;  %v153_v54 = vpop.permute.xlu1 %152  ;;  %3209 = vmatmul.mubr.msk.f32.gmra.mxu1 %vm757_vm10, %v4639_v19  ;;  %v1142_v56 = vsub.f32 %v4645_v35, %v5446_v43  ;;  %v156_v38 = vpop.permute.xlu0 %155 }
 0x18b   :  { %vm204_vm13 = vcmp.eq.s32.totalorder %v3586_v3, %v156_v38  ;;  %vm203_vm14 = vcmp.eq.s32.totalorder %v3586_v3, %v153_v54 }
 0x18c   :  { %v5447_v42 = vand.u32 4294901760, %v4658_v20  ;;  %v1143_v6 = vand.u32 4294901760, %v1142_v56 }
 0x18e   :  { %v1132_v53 = vsub.f32 %v4658_v20, %v5447_v42 }
 0x18f   :  { %v281_v17 = vpop.permute.xlu1 %280 }
 0x190   :  { %v1133_v1 = vand.u32 4294901760, %v1132_v53  ;;  %vm331_vm9 = vcmp.eq.s32.totalorder %v3586_v3, %v281_v17  ;;  %v159_v53 = vpop.permute.xlu0 %158 }
 0x191   :  { %vm363_vm15 = vmor %vm203_vm14, %vm331_vm9  ;;  %vm205_vm12 = vcmp.eq.s32.totalorder %v3586_v3, %v159_v53 }
 0x192   :  { %3148 = vmatprep.mubr.f32.mxu0 %v1133_v1 }
 0x193   :  { %v284_v8 = vpop.permute.xlu1 %283  ;;  %3149 = vmatmul.mubr.f32.gmra.mxu0 %v1143_v6 }
 0x194   :  { %vm332_vm8 = vcmp.eq.s32.totalorder %v3586_v3, %v284_v8 }
 0x195   :  { %vm364_vm0 = vmor %vm204_vm13, %vm332_vm8 }
 0x196   :  { %vm524_vm5 = vmor %vm364_vm0, %vm492_vm3 }
 0x198   :  { %v441_v29 = vpop.permute.xlu1 %440 }
 0x199   :  { %vm491_vm4 = vcmp.eq.s32.totalorder %v3586_v3, %v441_v29 }
 0x19a   :  { %vm523_vm2 = vmor %vm363_vm15, %vm491_vm4 }
 0x19d   :  { %v601_v43 = vpop.permute.xlu1 %600 }
 0x19e   :  { %vm651_vm1 = vcmp.eq.s32.totalorder %v3586_v3, %v601_v43 }
 0x19f   :  { %vm683_vm11 = vmor %vm523_vm2, %vm651_vm1 }
 0x1a0   :  { %v4677_v56 = vsel %vm683_vm11, 1.0, %v5558_v44 }
 0x1a1   :  { %5572 = vst [vmem:[#allocation10_spill] sm:$0xff] %v4677_v56  ;;  %v825_v8 = vsel %vm757_vm10, %v4677_v56, 0  ;;  %v604_v54 = vpop.permute.xlu1 %603  ;;  %3211 = vmatprep.mubr.msk.f32.mxu1 %vm757_vm10, %v4677_v56 }
 0x1a2   :  { %v4685_v29 = vsub.f32 %v825_v8, %v825_v8  ;;  %vm652_vm6 = vcmp.eq.s32.totalorder %v3586_v3, %v604_v54  ;;  %v4701_v8 = vpop.permute.xlu0 %173 }
 0x1a3   :  { %vm684_vm7 = vmor %vm524_vm5, %vm652_vm6 }
 0x1a4   :  { %v4689_v43 = vsel %vm684_vm7, 1.0, %v5558_v44  ;;  %v5457_v17 = vand.u32 4294901760, %v4685_v29 }
 0x1a5   :  { %5573 = vst [vmem:[#allocation16_spill] sm:$0xff] %v4689_v43  ;;  %v828_v55 = vsel %vm757_vm10, %v4689_v43, 0  ;;  %3212 = vmatmul.mubr.msk.f32.gmra.mxu1 %vm757_vm10, %v4689_v43 }
 0x1a6   :  { %v4696_v1 = vsub.f32 %v828_v55, %v828_v55  ;;  %v287_v6 = vpop.permute.xlu1 %286  ;;  %v1152_v38 = vsub.f32 %v4685_v29, %v5457_v17  ;;  %v4707_v43 = vpop.permute.xlu0 %176 }
 0x1a7   :  { %vm333_vm9 = vcmp.eq.s32.totalorder %v3586_v3, %v287_v6 }
 0x1a8   :  { %v1153_v54 = vand.u32 4294901760, %v1152_v38  ;;  %v5456_v42 = vand.u32 4294901760, %v4696_v1  ;;  %vm365_vm8 = vmor %vm205_vm12, %vm333_vm9  ;;  %v5574_v38 = vld [vmem:[#allocation22_spill] sm:$0xff] }
 0x1a9   :  { %vm653_vm14 = vcmp.eq.s32.totalorder %v3586_v3, %v5574_v38 }
 0x1aa   :  { %3151 = vmatprep.mubr.f32.mxu0 %v1153_v54  ;;  %v1162_v56 = vsub.f32 %v4696_v1, %v5456_v42  ;;  %v290_v54 = vpop.permute.xlu0 %289 }
 0x1ab   :  { %v162_v19 = vpop.permute.xlu1 %161  ;;  %vm334_vm2 = vcmp.eq.s32.totalorder %v3586_v3, %v290_v54 }
 0x1ac   :  { %v1163_v51 = vand.u32 4294901760, %v1162_v56  ;;  %vm206_vm0 = vcmp.eq.s32.totalorder %v3586_v3, %v162_v19 }
 0x1ad   :  { %vm366_vm11 = vmor %vm206_vm0, %vm334_vm2 }
 0x1ae   :  { %3152 = vmatmul.mubr.f32.gmra.mxu0 %v1163_v51  ;;  %v293_v50 = vpop.permute.xlu0 %292 }
 0x1af   :  { %vm335_vm12 = vcmp.eq.s32.totalorder %v3586_v3, %v293_v50 }
 0x1b0   :  { %v447_v55 = vpop.permute.xlu1 %446 }
 0x1b1   :  { %vm493_vm13 = vcmp.eq.s32.totalorder %v3586_v3, %v447_v55 }
 0x1b2   :  { %vm525_vm4 = vmor %vm365_vm8, %vm493_vm13 }
 0x1b3   :  { %vm685_vm15 = vmor %vm525_vm4, %vm653_vm14 }
 0x1b4   :  { %v450_v42 = vpop.permute.xlu1 %449  ;;  %v4715_v56 = vsel %vm685_vm15, 1.0, %v5558_v44 }
 0x1b5   :  { %5575 = vst [vmem:[#allocation17_spill] sm:$0xff] %v4715_v56  ;;  %v831_v53 = vsel %vm757_vm10, %v4715_v56, 0  ;;  %3214 = vmatprep.mubr.msk.f32.mxu1 %vm757_vm10, %v4715_v56  ;;  %vm494_vm1 = vcmp.eq.s32.totalorder %v3586_v3, %v450_v42 }
 0x1b6   :  { %v4723_v51 = vsub.f32 %v831_v53, %v831_v53  ;;  %vm526_vm3 = vmor %vm366_vm11, %vm494_vm1  ;;  %vm495_vm1 = vcmp.eq.s32.totalorder %v3586_v3, %v4073_v30 }
 0x1b8   :  { %v5462_v6 = vand.u32 4294901760, %v4723_v51 }
 0x1b9   :  { %v610_v55 = vpop.permute.xlu1 %609 }
 0x1ba   :  { %vm654_vm5 = vcmp.eq.s32.totalorder %v3586_v3, %v610_v55  ;;  %v1172_v38 = vsub.f32 %v4723_v51, %v5462_v6 }
 0x1bb   :  { %vm686_vm6 = vmor %vm526_vm3, %vm654_vm5 }
 0x1bc   :  { %v4732_v19 = vsel %vm686_vm6, 1.0, %v5558_v44  ;;  %v1173_v54 = vand.u32 4294901760, %v1172_v38 }
 0x1bd   :  { %5576 = vst [vmem:[#allocation21_spill] sm:$0xff] %v4732_v19  ;;  %v834_v53 = vsel %vm757_vm10, %v4732_v19, 0  ;;  %3215 = vmatmul.mubr.msk.f32.gmra.mxu1 %vm757_vm10, %v4732_v19 }
 0x1be   :  { %v4738_v42 = vsub.f32 %v834_v53, %v834_v53  ;;  %v165_v17 = vpop.permute.xlu1 %164  ;;  %3154 = vmatprep.mubr.f32.mxu0 %v1173_v54 }
 0x1bf   :  { %vm207_vm7 = vcmp.eq.s32.totalorder %v3586_v3, %v165_v17  ;;  %v5581_v17 = vld [vmem:[#allocation23_spill] sm:$0xff] }
 0x1c0   :  { %v3180_v55 = vpop.f32.mrf.mxu1  ;;  %v5479_v56 = vand.u32 4294901760, %v4738_v42  ;;  %vm4749_vm8 = vmor %vm207_vm7, %vm335_vm12  ;;  %vm656_vm15 = vcmp.eq.s32.totalorder %v3586_v3, %v5581_v17 }
 0x1c1   :  { %vm527_vm11 = vmor %vm4749_vm8, %vm495_vm1  ;;  %vm210_vm8 = vcmp.eq.s32.totalorder %v3586_v3, %v4701_v8 }
 0x1c2   :  { %v168_v31 = vpop.permute.xlu1 %167  ;;  %v1346_v6 = vpop.f32.mrf.mxu1  ;;  %v1182_v0 = vsub.f32 %v4738_v42, %v5479_v56 }
 0x1c3   :  { %vm208_vm13 = vcmp.eq.s32.totalorder %v3586_v3, %v168_v31 }
 0x1c4   :  { %v3183_v38 = vpop.f32.mrf.mxu1  ;;  %v1183_v47 = vand.u32 4294901760, %v1182_v0 }
 0x1c6   :  { %3155 = vmatmul.mubr.f32.gmra.mxu0 %v1183_v47  ;;  %v1358_v21 = vpop.f32.mrf.mxu1 }
 0x1c7   :  { %v296_v52 = vpop.permute.xlu1 %295 }
 0x1c8   :  { %v3186_v19 = vpop.f32.mrf.mxu1  ;;  %vm336_vm9 = vcmp.eq.s32.totalorder %v3586_v3, %v296_v52 }
 0x1c9   :  { %v3120_v54 = vpop.f32.mrf.mxu0  ;;  %vm368_vm14 = vmor %vm208_vm13, %vm336_vm9 }
 0x1ca   :  { %v4747_v53 = vadd.f32 %v3180_v55, %v3120_v54  ;;  %v1370_v16 = vpop.f32.mrf.mxu1 }
 0x1cb   :  { %v935_v23 = vpop.f32.mrf.mxu0 }
 0x1cc   :  { %5577 = vst [vmem:[#allocation22_spill] sm:$0xff] %v4747_v53  ;;  %v4754_v0 = vadd.f32 %v1346_v6, %v935_v23  ;;  %v456_v47 = vpop.permute.xlu1 %455  ;;  %v3189_v62 = vpop.f32.mrf.mxu1 }
 0x1cd   :  { %vm496_vm4 = vcmp.eq.s32.totalorder %v3586_v3, %v456_v47  ;;  %v3123_v50 = vpop.f32.mrf.mxu0 }
 0x1ce   :  { %5580 = vst [vmem:[#allocation33_spill] sm:$0xff] %v4754_v0  ;;  %vm528_vm0 = vmor %vm368_vm14, %vm496_vm4  ;;  %v4759_v52 = vadd.f32 %v3183_v38, %v3123_v50  ;;  %v1382_v55 = vpop.f32.mrf.mxu1 }
 0x1cf   :  { %vm688_vm2 = vmor %vm528_vm0, %vm656_vm15  ;;  %v955_v54 = vpop.f32.mrf.mxu0 }
 0x1d0   :  { %5582 = vst [vmem:[#allocation23_spill] sm:$0xff] %v4759_v52  ;;  %v4761_v53 = vadd.f32 %v1358_v21, %v955_v54  ;;  %v4764_v23 = vsel %vm688_vm2, 1.0, %v5558_v44  ;;  %v3192_v17 = vpop.f32.mrf.mxu1  ;;  %vm498_vm2 = vcmp.eq.s32.totalorder %v3586_v3, %v4090_v11 }
 0x1d1   :  { %5584 = vst [vmem:[#allocation35_spill] sm:$0xff] %v4764_v23  ;;  %v613_v31 = vpop.permute.xlu1 %612  ;;  %v3126_v6 = vpop.f32.mrf.mxu0  ;;  %v840_v47 = vsel %vm757_vm10, %v4764_v23, 0 }
 0x1d2   :  { %5583 = vst [vmem:[#allocation34_spill] sm:$0xff] %v4761_v53  ;;  %vm655_vm3 = vcmp.eq.s32.totalorder %v3586_v3, %v613_v31  ;;  %v4773_v38 = vadd.f32 %v3186_v19, %v3126_v6  ;;  %v4775_v21 = vsub.f32 %v840_v47, %v840_v47  ;;  %v1394_v31 = vpop.f32.mrf.mxu1 }
 0x1d3   :  { %vm687_vm5 = vmor %vm527_vm11, %vm655_vm3  ;;  %v975_v50 = vpop.f32.mrf.mxu0 }
 0x1d4   :  { %5585 = vst [vmem:[#allocation36_spill] sm:$0xff] %v4773_v38  ;;  %v4778_v54 = vsel %vm687_vm5, 1.0, %v5558_v44  ;;  %v4780_v30 = vadd.f32 %v1370_v16, %v975_v50  ;;  %v5492_v56 = vand.u32 4294901760, %v4775_v21 }
 0x1d5   :  { %5586 = vst [vmem:[#allocation37_spill] sm:$0xff] %v4778_v54  ;;  %v837_v53 = vsel %vm757_vm10, %v4778_v54, 0  ;;  %v3129_v52 = vpop.f32.mrf.mxu0  ;;  %3217 = vmatprep.mubr.msk.f32.mxu1 %vm757_vm10, %v4778_v54  ;;  %v3195_v54 = vpop.f32.mrf.mxu1 }
 0x1d6   :  { %5587 = vst [vmem:[#allocation38_spill] sm:$0xff] %v4780_v30  ;;  %v4787_v19 = vsub.f32 %v837_v53, %v837_v53  ;;  %v4789_v6 = vadd.f32 %v3189_v62, %v3129_v52  ;;  %v171_v47 = vpop.permute.xlu1 %170  ;;  %3218 = vmatmul.mubr.msk.f32.gmra.mxu1 %vm757_vm10, %v4764_v23  ;;  %v1202_v0 = vsub.f32 %v4775_v21, %v5492_v56 }
 0x1d7   :  { %v995_v16 = vpop.f32.mrf.mxu0  ;;  %v1406_v15 = vpop.f32.mrf.mxu1  ;;  %vm209_vm12 = vcmp.eq.s32.totalorder %v3586_v3, %v171_v47 }
 0x1d8   :  { %5588 = vst [vmem:[#allocation39_spill] sm:$0xff] %v4789_v6  ;;  %v4793_v50 = vadd.f32 %v1382_v55, %v995_v16  ;;  %v5493_v30 = vand.u32 4294901760, %v4787_v19 }
 0x1d9   :  { %v3132_v38 = vpop.f32.mrf.mxu0 }
 0x1da   :  { %5589 = vst [vmem:[#allocation40_spill] sm:$0xff] %v4793_v50  ;;  %v4799_v53 = vadd.f32 %v3192_v17, %v3132_v38  ;;  %v1192_v62 = vsub.f32 %v4787_v19, %v5493_v30  ;;  %v1203_v50 = vand.u32 4294901760, %v1202_v0 }
 0x1db   :  { %v299_v52 = vpop.permute.xlu1 %298  ;;  %v1015_v6 = vpop.f32.mrf.mxu0 }
 0x1dc   :  { %v4804_v23 = vadd.f32 %v1394_v31, %v1015_v6  ;;  %v1193_v55 = vand.u32 4294901760, %v1192_v62  ;;  %vm337_vm6 = vcmp.eq.s32.totalorder %v3586_v3, %v299_v52 }
 0x1dd   :  { %v3135_v16 = vpop.f32.mrf.mxu0  ;;  %vm369_vm13 = vmor %vm209_vm12, %vm337_vm6  ;;  %vm211_vm6 = vcmp.eq.s32.totalorder %v3586_v3, %v4707_v43 }
 0x1de   :  { %v4806_v22 = vadd.f32 %v3195_v54, %v3135_v16  ;;  %3157 = vmatprep.mubr.f32.mxu0 %v1193_v55 }
 0x1df   :  { %v302_v41 = vpop.permute.xlu1 %301  ;;  %v1035_v56 = vpop.f32.mrf.mxu0  ;;  %3158 = vmatmul.mubr.f32.gmra.mxu0 %v1203_v50 }
 0x1e0   :  { %v4808_v17 = vadd.f32 %v1406_v15, %v1035_v56  ;;  %vm338_vm7 = vcmp.eq.s32.totalorder %v3586_v3, %v302_v41 }
 0x1e1   :  { %vm370_vm14 = vmor %vm210_vm8, %vm338_vm7 }
 0x1e2   :  { %vm530_vm1 = vmor %vm370_vm14, %vm498_vm2 }
 0x1e4   :  { %v459_v38 = vpop.permute.xlu1 %458 }
 0x1e5   :  { %vm497_vm9 = vcmp.eq.s32.totalorder %v3586_v3, %v459_v38  ;;  %v3198_v15 = vpop.f32.mrf.mxu1 }
 0x1e6   :  { %vm529_vm4 = vmor %vm369_vm13, %vm497_vm9 }
 0x1e7   :  { %v1418_v47 = vpop.f32.mrf.mxu1 }
 0x1e9   :  { %v619_v0 = vpop.permute.xlu1 %618 }
 0x1ea   :  { %vm657_vm15 = vcmp.eq.s32.totalorder %v3586_v3, %v619_v0 }
 0x1eb   :  { %vm689_vm0 = vmor %vm529_vm4, %vm657_vm15 }
 0x1ec   :  { %v4818_v54 = vsel %vm689_vm0, 1.0, %v5558_v44 }
 0x1ed   :  { %v843_v41 = vsel %vm757_vm10, %v4818_v54, 0  ;;  %v622_v56 = vpop.permute.xlu1 %621  ;;  %3220 = vmatprep.mubr.msk.f32.mxu1 %vm757_vm10, %v4818_v54 }
 0x1ee   :  { %v4826_v8 = vsub.f32 %v843_v41, %v843_v41  ;;  %vm658_vm11 = vcmp.eq.s32.totalorder %v3586_v3, %v622_v56  ;;  %v3138_v31 = vpop.f32.mrf.mxu0  ;;  %v308_v56 = vpop.permute.xlu0 %307 }
 0x1ef   :  { %vm690_vm3 = vmor %vm530_vm1, %vm658_vm11  ;;  %v4829_v6 = vadd.f32 %v3198_v15, %v3138_v31  ;;  %vm340_vm14 = vcmp.eq.s32.totalorder %v3586_v3, %v308_v56 }
 0x1f0   :  { %v4832_v50 = vsel %vm690_vm3, 1.0, %v5558_v44  ;;  %v1055_v11 = vpop.f32.mrf.mxu0  ;;  %v5495_v62 = vand.u32 4294901760, %v4826_v8 }
 0x1f1   :  { %v846_v52 = vsel %vm757_vm10, %v4832_v50, 0  ;;  %v4837_v55 = vadd.f32 %v1418_v47, %v1055_v11  ;;  %3221 = vmatmul.mubr.msk.f32.gmra.mxu1 %vm757_vm10, %v4832_v50 }
 0x1f2   :  { %v4841_v16 = vsub.f32 %v846_v52, %v846_v52  ;;  %v305_v38 = vpop.permute.xlu1 %304  ;;  %v1212_v0 = vsub.f32 %v4826_v8, %v5495_v62  ;;  %v625_v30 = vpop.permute.xlu0 %624 }
 0x1f3   :  { %5590 = vst [vmem:[#allocation41_spill] sm:$0xff] %v4837_v55  ;;  %vm339_vm5 = vcmp.eq.s32.totalorder %v3586_v3, %v305_v38  ;;  %vm659_vm7 = vcmp.eq.s32.totalorder %v3586_v3, %v625_v30 }
 0x1f4   :  { %v1213_v15 = vand.u32 4294901760, %v1212_v0  ;;  %v5494_v41 = vand.u32 4294901760, %v4841_v16  ;;  %vm371_vm12 = vmor %vm211_vm6, %vm339_vm5 }
 0x1f6   :  { %3160 = vmatprep.mubr.f32.mxu0 %v1213_v15  ;;  %v1222_v31 = vsub.f32 %v4841_v16, %v5494_v41 }
 0x1f7   :  { %v180_v47 = vpop.permute.xlu1 %179 }
 0x1f8   :  { %v1223_v11 = vand.u32 4294901760, %v1222_v31  ;;  %vm212_vm4 = vcmp.eq.s32.totalorder %v3586_v3, %v180_v47 }
 0x1f9   :  { %vm372_vm0 = vmor %vm212_vm4, %vm340_vm14 }
 0x1fa   :  { %3161 = vmatmul.mubr.f32.gmra.mxu0 %v1223_v11 }
 0x1fc   :  { %v465_v52 = vpop.permute.xlu1 %464 }
 0x1fd   :  { %vm499_vm9 = vcmp.eq.s32.totalorder %v3586_v3, %v465_v52 }
 0x1fe   :  { %vm531_vm8 = vmor %vm371_vm12, %vm499_vm9  ;;  %v3201_v38 = vpop.f32.mrf.mxu1 }
 0x1ff   :  { %vm691_vm13 = vmor %vm531_vm8, %vm659_vm7 }
 0x200   :  { %v4856_v0 = vsel %vm691_vm13, 1.0, %v5558_v44  ;;  %v468_v15 = vpop.permute.xlu1 %467  ;;  %v1430_v41 = vpop.f32.mrf.mxu1 }
 0x201   :  { %v849_v31 = vsel %vm757_vm10, %v4856_v0, 0  ;;  %3223 = vmatprep.mubr.msk.f32.mxu1 %vm757_vm10, %v4856_v0  ;;  %vm500_vm15 = vcmp.eq.s32.totalorder %v3586_v3, %v468_v15 }
 0x202   :  { %v4864_v43 = vsub.f32 %v849_v31, %v849_v31  ;;  %vm532_vm2 = vmor %vm372_vm0, %vm500_vm15 }
 0x204   :  { %v5496_v30 = vand.u32 4294901760, %v4864_v43 }
 0x205   :  { %v628_v11 = vpop.permute.xlu1 %627 }
 0x206   :  { %vm660_vm1 = vcmp.eq.s32.totalorder %v3586_v3, %v628_v11  ;;  %v1232_v52 = vsub.f32 %v4864_v43, %v5496_v30  ;;  %v5591_v30 = vand.u32 4294901760, %v4180_v9 }
 0x207   :  { %vm692_vm11 = vmor %vm532_vm2, %vm660_vm1  ;;  %v3141_v56 = vpop.f32.mrf.mxu0 }
 0x208   :  { %v4873_v47 = vsel %vm692_vm11, 1.0, %v5558_v44  ;;  %v4875_v31 = vadd.f32 %v3201_v38, %v3141_v56  ;;  %v1233_v15 = vand.u32 4294901760, %v1232_v52  ;;  %v5592_v38 = vand.u32 4294901760, %v4222_v2 }
 0x209   :  { %v852_v62 = vsel %vm757_vm10, %v4873_v47, 0  ;;  %v1075_v55 = vpop.f32.mrf.mxu0  ;;  %3224 = vmatmul.mubr.msk.f32.gmra.mxu1 %vm757_vm10, %v4873_v47  ;;  %v5593_v52 = vand.u32 4294901760, %v4138_v33 }
 0x20a   :  { %v4881_v3 = vsub.f32 %v852_v62, %v852_v62  ;;  %v4883_v11 = vadd.f32 %v1430_v41, %v1075_v55  ;;  %3163 = vmatprep.mubr.f32.mxu0 %v1233_v15  ;;  %3298 = vmatprep.mubr.f32.mxu1 %v5591_v30  ;;  %v5594_v55 = vand.u32 4294901760, %v4144_v58  ;;  %v5595_v41 = vand.u32 4294901760, %v4283_v49  ;;  %v5598_v30 = vld [vmem:[#allocation9_spill] sm:$0xff] }
 0x20b   :  { %v5606_v15 = vand.u32 4294901760, %v4386_v46 }
 0x20c   :  { %v1241_v44 = vand.u32 4294901760, %v4881_v3 }
 0x20d   :  { %3299 = vmatmul.mubr.f32.vlgmr.msra.gmra.mxu1 %v5592_v38 }
 0x20e   :  { %3301 = vmatprep.mubr.f32.mxu1 %v5593_v52  ;;  %v1242_v56 = vsub.f32 %v4881_v3, %v1241_v44  ;;  %3407 = vmatpush3.msra.mxu1 %v3799_v57  ;;  %v5596_v57 = vand.u32 4294901760, %v4235_v27 }
 0x20f   :  { %3408 = vmatprep.subr.mxu1 %v3813_v61 }
 0x210   :  { %v1243_v62 = vand.u32 4294901760, %v1242_v56  ;;  %3409 = vmatpush3.msra.mxu1 %v3813_v61  ;;  %v5597_v61 = vand.u32 4294901760, %v4331_v10 }
 0x211   :  { %3302 = vmatmul.mubr.f32.gmra.mxu1 %v5594_v55  ;;  %3410 = vmatprep.subr.mxu1 %v3832_v7  ;;  %v5609_v55 = vand.u32 4294901760, %v4473_v48 }
 0x212   :  { %3164 = vmatmul.mubr.f32.gmra.mxu0 %v1243_v62  ;;  %3304 = vmatprep.mubr.f32.mxu1 %v5595_v41  ;;  %v5612_v41 = vand.u32 4294901760, %v4554_v45 }
 0x213   :  { %3238 = vmatprep.mubr.f32.mxu0 %v4180_v9  ;;  %3411 = vmatpush3.msra.mxu1 %v3832_v7  ;;  %v5599_v7 = vand.u32 4294901760, %v4290_v18  ;;  %v5600_v9 = vand.u32 4294901760, %v4369_v59 }
 0x214   :  { %3412 = vmatprep.subr.mxu1 %v3848_v13 }
 0x215   :  { %3305 = vmatmul.mubr.f32.gmra.mxu1 %v5596_v57  ;;  %v5613_v57 = vand.u32 4294901760, %v4567_v32 }
 0x216   :  { %3239 = vmatmul.mubr.f32.vlgmr.msra.gmra.mxu0 %v4222_v2  ;;  %3307 = vmatprep.mubr.f32.mxu1 %v5597_v61  ;;  %v5601_v2 = vld [vmem:[#allocation11_spill] sm:$0xff]  ;;  %v5620_v61 = vand.u32 4294901760, %v4723_v51 }
 0x217   :  { %3347 = vmatpush3.msra.mxu0 %v5545_v25  ;;  %3241 = vmatprep.mubr.f32.mxu0 %v4138_v33  ;;  %v5603_v33 = vld [vmem:[#allocation12_spill] sm:$0xff]  ;;  %v5605_v25 = vld [vmem:[#allocation13_spill] sm:$0xff] }
 0x218   :  { %3348 = vmatprep.subr.mxu0 %v5598_v30  ;;  %3413 = vmatpush3.msra.mxu1 %v3848_v13  ;;  %v5602_v13 = vand.u32 4294901760, %v4341_v14 }
 0x219   :  { %3308 = vmatmul.mubr.f32.gmra.mxu1 %v5599_v7  ;;  %3349 = vmatpush3.msra.mxu0 %v5598_v30 }
 0x21a   :  { %3242 = vmatmul.mubr.f32.gmra.mxu0 %v4144_v58  ;;  %3310 = vmatprep.mubr.f32.mxu1 %v5600_v9  ;;  %v5604_v58 = vand.u32 4294901760, %v4396_v40  ;;  %v5624_v9 = vand.u32 4294901760, %v4787_v19 }
 0x21b   :  { %3244 = vmatprep.mubr.f32.mxu0 %v4283_v49  ;;  %3350 = vmatprep.subr.mxu0 %v5601_v2  ;;  %v3204_v49 = vpop.f32.mrf.mxu1 }
 0x21c   :  { %3351 = vmatpush3.msra.mxu0 %v5601_v2  ;;  %3414 = vmatprep.subr.mxu1 %v3868_v24  ;;  %v5627_v2 = vand.u32 4294901760, %v4841_v16 }
 0x21d   :  { %3311 = vmatmul.mubr.f32.gmra.mxu1 %v5602_v13  ;;  %3352 = vmatprep.subr.mxu0 %v5603_v33  ;;  %v1442_v56 = vpop.f32.mrf.mxu1  ;;  %v5641_v13 = vld [vmem:[#allocation15_spill] sm:$0xff] }
 0x21e   :  { %3245 = vmatmul.mubr.f32.gmra.mxu0 %v4235_v27  ;;  %3313 = vmatprep.mubr.f32.mxu1 %v5604_v58  ;;  %v5607_v27 = vand.u32 4294901760, %v4446_v37 }
 0x21f   :  { %3247 = vmatprep.mubr.f32.mxu0 %v4331_v10  ;;  %3353 = vmatpush3.msra.mxu0 %v5603_v33  ;;  %v5608_v10 = vld [vmem:[#allocation14_spill] sm:$0xff]  ;;  %v5642_v33 = vld [vmem:[#allocation5_spill] sm:$0xff] }
 0x220   :  { %3354 = vmatprep.subr.mxu0 %v5605_v25  ;;  %3415 = vmatpush3.msra.mxu1 %v3868_v24 }
 0x221   :  { %3314 = vmatmul.mubr.f32.gmra.mxu1 %v5606_v15  ;;  %3355 = vmatpush3.msra.mxu0 %v5605_v25  ;;  %v5644_v15 = vld [vmem:[#allocation18_spill] sm:$0xff] }
 0x222   :  { %v3144_v38 = vpop.f32.mrf.mxu0  ;;  %3248 = vmatmul.mubr.f32.gmra.mxu0 %v4290_v18  ;;  %3316 = vmatprep.mubr.f32.mxu1 %v5607_v27  ;;  %v5610_v18 = vand.u32 4294901760, %v4516_v5 }
 0x223   :  { %v4941_v52 = vadd.f32 %v3204_v49, %v3144_v38  ;;  %3250 = vmatprep.mubr.f32.mxu0 %v4369_v59  ;;  %3356 = vmatprep.subr.mxu0 %v5608_v10  ;;  %v5611_v59 = vand.u32 4294901760, %v4503_v36  ;;  %v5643_v49 = vld [vmem:[#allocation19_spill] sm:$0xff] }
 0x224   :  { %v1095_v62 = vpop.f32.mrf.mxu0  ;;  %3416 = vmatprep.subr.mxu1 %v3885_v39  ;;  %3357 = vmatpush3.msra.mxu0 %v5608_v10 }
 0x225   :  { %v4947_v24 = vadd.f32 %v1442_v56, %v1095_v62  ;;  %3317 = vmatmul.mubr.f32.gmra.mxu1 %v5609_v55  ;;  %v5647_v62 = vld [vmem:[#allocation7_spill] sm:$0xff]  ;;  %v5648_v55 = vld [vmem:[#allocation20_spill] sm:$0xff] }
 0x226   :  { %3251 = vmatmul.mubr.f32.gmra.mxu0 %v4341_v14  ;;  %3319 = vmatprep.mubr.f32.mxu1 %v5610_v18  ;;  %v5614_v14 = vand.u32 4294901760, %v4593_v26  ;;  %v5649_v18 = vld [vmem:[#allocation6_spill] sm:$0xff] }
 0x227   :  { %3253 = vmatprep.mubr.f32.mxu0 %v4396_v40  ;;  %3417 = vmatpush3.msra.mxu1 %v3885_v39  ;;  %v5615_v39 = vand.u32 4294901760, %v4613_v12  ;;  %v5616_v40 = vand.u32 4294901760, %v4658_v20 }
 0x229   :  { %3320 = vmatmul.mubr.f32.gmra.mxu1 %v5611_v59  ;;  %v5650_v59 = vld [vmem:[#allocation10_spill] sm:$0xff] }
 0x22a   :  { %3254 = vmatmul.mubr.f32.gmra.mxu0 %v4386_v46  ;;  %3322 = vmatprep.mubr.f32.mxu1 %v5612_v41  ;;  %v5617_v46 = vand.u32 4294901760, %v4645_v35  ;;  %v5651_v41 = vld [vmem:[#allocation16_spill] sm:$0xff] }
 0x22b   :  { %3256 = vmatprep.mubr.f32.mxu0 %v4446_v37  ;;  %v5618_v37 = vand.u32 4294901760, %v4685_v29 }
 0x22d   :  { %3323 = vmatmul.mubr.f32.gmra.mxu1 %v5613_v57  ;;  %v5652_v57 = vld [vmem:[#allocation17_spill] sm:$0xff] }
 0x22e   :  { %3257 = vmatmul.mubr.f32.gmra.mxu0 %v4473_v48  ;;  %3325 = vmatprep.mubr.f32.mxu1 %v5614_v14  ;;  %v5653_v14 = vld [vmem:[#allocation21_spill] sm:$0xff] }
 0x22f   :  { %3259 = vmatprep.mubr.f32.mxu0 %v4516_v5  ;;  %v5619_v5 = vand.u32 4294901760, %v4696_v1 }
 0x231   :  { %3326 = vmatmul.mubr.f32.gmra.mxu1 %v5615_v39  ;;  %v3207_v48 = vpop.f32.mrf.mxu1  ;;  %v5654_v39 = vld [vmem:[#allocation37_spill] sm:$0xff] }
 0x232   :  { %3260 = vmatmul.mubr.f32.gmra.mxu0 %v4503_v36  ;;  %3328 = vmatprep.mubr.f32.mxu1 %v5616_v40  ;;  %v5655_v40 = vld [vmem:[#allocation35_spill] sm:$0xff] }
 0x233   :  { %3262 = vmatprep.mubr.f32.mxu0 %v4554_v45 }
 0x235   :  { %3329 = vmatmul.mubr.f32.gmra.mxu1 %v5617_v46 }
 0x236   :  { %3263 = vmatmul.mubr.f32.gmra.mxu0 %v4567_v32  ;;  %3331 = vmatprep.mubr.f32.mxu1 %v5618_v37  ;;  %v1454_v32 = vpop.f32.mrf.mxu1 }
 0x237   :  { %3265 = vmatprep.mubr.f32.mxu0 %v4593_v26  ;;  %v5623_v26 = vand.u32 4294901760, %v4738_v42 }
 0x239   :  { %3332 = vmatmul.mubr.f32.gmra.mxu1 %v5619_v5 }
 0x23a   :  { %v3147_v36 = vpop.f32.mrf.mxu0  ;;  %3266 = vmatmul.mubr.f32.gmra.mxu0 %v4613_v12  ;;  %3334 = vmatprep.mubr.f32.mxu1 %v5620_v61  ;;  %v5625_v12 = vand.u32 4294901760, %v4775_v21 }
 0x23b   :  { %v4985_v45 = vadd.f32 %v3207_v48, %v3147_v36  ;;  %3268 = vmatprep.mubr.f32.mxu0 %v4658_v20  ;;  %v5626_v20 = vand.u32 4294901760, %v4826_v8 }
 0x23c   :  { %v1115_v30 = vpop.f32.mrf.mxu0 }
 0x23d   :  { %5621 = vst [vmem:[#allocation9_spill] sm:$0xff] %v4985_v45  ;;  %v4988_v7 = vadd.f32 %v1454_v32, %v1115_v30  ;;  %3335 = vmatmul.mubr.f32.gmra.mxu1 %v5623_v26  ;;  %v5699_v45 = vld [vmem:[#allocation38_spill] sm:$0xff] }
 0x23e   :  { %3269 = vmatmul.mubr.f32.gmra.mxu0 %v4645_v35  ;;  %3337 = vmatprep.mubr.f32.mxu1 %v5624_v9  ;;  %v5628_v35 = vand.u32 4294901760, %v4864_v43 }
 0x23f   :  { %5622 = vst [vmem:[#allocation11_spill] sm:$0xff] %v4988_v7  ;;  %3271 = vmatprep.mubr.f32.mxu0 %v4685_v29 }
 0x241   :  { %3338 = vmatmul.mubr.f32.gmra.mxu1 %v5625_v12 }
 0x242   :  { %3272 = vmatmul.mubr.f32.gmra.mxu0 %v4696_v1  ;;  %3340 = vmatprep.mubr.f32.mxu1 %v5626_v20 }
 0x243   :  { %3274 = vmatprep.mubr.f32.mxu0 %v4723_v51 }
 0x245   :  { %3341 = vmatmul.mubr.f32.gmra.mxu1 %v5627_v2 }
 0x246   :  { %3275 = vmatmul.mubr.f32.gmra.mxu0 %v4738_v42  ;;  %3343 = vmatprep.mubr.f32.mxu1 %v5628_v35 }
 0x247   :  { %3277 = vmatprep.mubr.f32.mxu0 %v4787_v19  ;;  %v5630_v19 = vld [vmem:[#allocation25_spill] sm:$0xff] }
 0x249   :  { %3344 = vmatmul.mubr.f32.gmra.mxu1 %v1241_v44  ;;  %v5640_v44 = vld [vmem:[#allocation24_spill] sm:$0xff] }
 0x24a   :  { %3278 = vmatmul.mubr.f32.gmra.mxu0 %v4775_v21  ;;  %3418 = vmatprep.mubr.msk.f32.mxu1 %vm757_vm10, %v4156_v28  ;;  %v3210_v29 = vpop.f32.mrf.mxu1 }
 0x24b   :  { %3280 = vmatprep.mubr.f32.mxu0 %v4826_v8 }
 0x24c   :  { %v1466_v42 = vpop.f32.mrf.mxu1 }
 0x24d   :  { %3419 = vmatmul.mubr.msk.f32.vlgmr.msra.gmra.mxu1 %vm757_vm10, %v4197_v4 }
 0x24e   :  { %3281 = vmatmul.mubr.f32.gmra.mxu0 %v4841_v16  ;;  %3421 = vmatprep.mubr.msk.f32.mxu1 %vm757_vm10, %v4103_v60  ;;  %v5632_v16 = vld [vmem:[#allocation28_spill] sm:$0xff] }
 0x24f   :  { %3283 = vmatprep.mubr.f32.mxu0 %v4864_v43  ;;  %v5633_v43 = vld [vmem:[#allocation26_spill] sm:$0xff] }
 0x251   :  { %3422 = vmatmul.mubr.msk.f32.gmra.mxu1 %vm757_vm10, %v4115_v34 }
 0x252   :  { %3284 = vmatmul.mubr.f32.gmra.mxu0 %v4881_v3  ;;  %3424 = vmatprep.mubr.msk.f32.mxu1 %vm757_vm10, %v4256_v63  ;;  %v5635_v3 = vld [vmem:[#allocation27_spill] sm:$0xff] }
 0x253   :  { %v3150_v1 = vpop.f32.mrf.mxu0  ;;  %3358 = vmatprep.mubr.msk.f32.mxu0 %vm757_vm10, %v4156_v28  ;;  %v5634_v28 = vld [vmem:[#allocation29_spill] sm:$0xff] }
 0x254   :  { %v5027_v51 = vadd.f32 %v3210_v29, %v3150_v1 }
 0x255   :  { %v1135_v21 = vpop.f32.mrf.mxu0  ;;  %3425 = vmatmul.mubr.msk.f32.gmra.mxu1 %vm757_vm10, %v5630_v19 }
 0x256   :  { %5629 = vst [vmem:[#allocation12_spill] sm:$0xff] %v5027_v51  ;;  %v5031_v8 = vadd.f32 %v1466_v42, %v1135_v21  ;;  %3359 = vmatmul.mubr.msk.f32.vlgmr.msra.gmra.mxu0 %vm757_vm10, %v4197_v4  ;;  %3427 = vmatprep.mubr.msk.f32.mxu1 %vm757_vm10, %v5632_v16  ;;  %v5636_v4 = vld [vmem:[#allocation31_spill] sm:$0xff] }
 0x257   :  { %3361 = vmatprep.mubr.msk.f32.mxu0 %vm757_vm10, %v4103_v60  ;;  %v5637_v60 = vld [vmem:[#allocation30_spill] sm:$0xff] }
 0x258   :  { %5631 = vst [vmem:[#allocation13_spill] sm:$0xff] %v5031_v8 }
 0x259   :  { %3428 = vmatmul.mubr.msk.f32.gmra.mxu1 %vm757_vm10, %v5633_v43 }
 0x25a   :  { %3362 = vmatmul.mubr.msk.f32.gmra.mxu0 %vm757_vm10, %v4115_v34  ;;  %3430 = vmatprep.mubr.msk.f32.mxu1 %vm757_vm10, %v5634_v28  ;;  %v5638_v34 = vld [vmem:[#allocation32_spill] sm:$0xff] }
 0x25b   :  { %3364 = vmatprep.mubr.msk.f32.mxu0 %vm757_vm10, %v4256_v63  ;;  %v5639_v63 = vld [vmem:[#allocation8_spill] sm:$0xff] }
 0x25d   :  { %3431 = vmatmul.mubr.msk.f32.gmra.mxu1 %vm757_vm10, %v5635_v3 }
 0x25e   :  { %3365 = vmatmul.mubr.msk.f32.gmra.mxu0 %vm757_vm10, %v5630_v19  ;;  %3433 = vmatprep.mubr.msk.f32.mxu1 %vm757_vm10, %v5636_v4 }
 0x25f   :  { %3367 = vmatprep.mubr.msk.f32.mxu0 %vm757_vm10, %v5632_v16 }
 0x261   :  { %3434 = vmatmul.mubr.msk.f32.gmra.mxu1 %vm757_vm10, %v5637_v60 }
 0x262   :  { %3368 = vmatmul.mubr.msk.f32.gmra.mxu0 %vm757_vm10, %v5633_v43  ;;  %3436 = vmatprep.mubr.msk.f32.mxu1 %vm757_vm10, %v5638_v34 }
 0x263   :  { %3370 = vmatprep.mubr.msk.f32.mxu0 %vm757_vm10, %v5634_v28 }
 0x265   :  { %3437 = vmatmul.mubr.msk.f32.gmra.mxu1 %vm757_vm10, %v5639_v63  ;;  %v3213_v58 = vpop.f32.mrf.mxu1 }
 0x266   :  { %3371 = vmatmul.mubr.msk.f32.gmra.mxu0 %vm757_vm10, %v5635_v3  ;;  %3439 = vmatprep.mubr.msk.f32.mxu1 %vm757_vm10, %v5640_v44 }
 0x267   :  { %3373 = vmatprep.mubr.msk.f32.mxu0 %vm757_vm10, %v5636_v4  ;;  %v1478_v27 = vpop.f32.mrf.mxu1 }
 0x269   :  { %3440 = vmatmul.mubr.msk.f32.gmra.mxu1 %vm757_vm10, %v5641_v13 }
 0x26a   :  { %3374 = vmatmul.mubr.msk.f32.gmra.mxu0 %vm757_vm10, %v5637_v60  ;;  %3442 = vmatprep.mubr.msk.f32.mxu1 %vm757_vm10, %v5642_v33 }
 0x26b   :  { %3376 = vmatprep.mubr.msk.f32.mxu0 %vm757_vm10, %v5638_v34 }
 0x26d   :  { %3443 = vmatmul.mubr.msk.f32.gmra.mxu1 %vm757_vm10, %v5643_v49 }
 0x26e   :  { %v3153_v25 = vpop.f32.mrf.mxu0  ;;  %3377 = vmatmul.mubr.msk.f32.gmra.mxu0 %vm757_vm10, %v5639_v63  ;;  %3445 = vmatprep.mubr.msk.f32.mxu1 %vm757_vm10, %v5644_v15 }
 0x26f   :  { %v5085_v38 = vadd.f32 %v3213_v58, %v3153_v25  ;;  %3379 = vmatprep.mubr.msk.f32.mxu0 %vm757_vm10, %v5640_v44 }
 0x270   :  { %v1155_v10 = vpop.f32.mrf.mxu0 }
 0x271   :  { %5645 = vst [vmem:[#allocation14_spill] sm:$0xff] %v5085_v38  ;;  %v5089_v56 = vadd.f32 %v1478_v27, %v1155_v10  ;;  %3446 = vmatmul.mubr.msk.f32.gmra.mxu1 %vm757_vm10, %v5647_v62 }
 0x272   :  { %3380 = vmatmul.mubr.msk.f32.gmra.mxu0 %vm757_vm10, %v5641_v13  ;;  %3448 = vmatprep.mubr.msk.f32.mxu1 %vm757_vm10, %v5648_v55 }
 0x273   :  { %5646 = vst [vmem:[#allocation25_spill] sm:$0xff] %v5089_v56  ;;  %3382 = vmatprep.mubr.msk.f32.mxu0 %vm757_vm10, %v5642_v33 }
 0x275   :  { %3449 = vmatmul.mubr.msk.f32.gmra.mxu1 %vm757_vm10, %v5649_v18 }
 0x276   :  { %3383 = vmatmul.mubr.msk.f32.gmra.mxu0 %vm757_vm10, %v5643_v49  ;;  %3451 = vmatprep.mubr.msk.f32.mxu1 %vm757_vm10, %v5650_v59 }
 0x277   :  { %3385 = vmatprep.mubr.msk.f32.mxu0 %vm757_vm10, %v5644_v15 }
 0x279   :  { %3452 = vmatmul.mubr.msk.f32.gmra.mxu1 %vm757_vm10, %v5651_v41 }
 0x27a   :  { %3386 = vmatmul.mubr.msk.f32.gmra.mxu0 %vm757_vm10, %v5647_v62  ;;  %3454 = vmatprep.mubr.msk.f32.mxu1 %vm757_vm10, %v5652_v57 }
 0x27b   :  { %3388 = vmatprep.mubr.msk.f32.mxu0 %vm757_vm10, %v5648_v55 }
 0x27d   :  { %3455 = vmatmul.mubr.msk.f32.gmra.mxu1 %vm757_vm10, %v5653_v14  ;;  %v3216_v46 = vpop.f32.mrf.mxu1 }
 0x27e   :  { %3389 = vmatmul.mubr.msk.f32.gmra.mxu0 %vm757_vm10, %v5649_v18  ;;  %3457 = vmatprep.mubr.msk.f32.mxu1 %vm757_vm10, %v5654_v39 }
 0x27f   :  { %3391 = vmatprep.mubr.msk.f32.mxu0 %vm757_vm10, %v5650_v59  ;;  %v1490_v5 = vpop.f32.mrf.mxu1 }
 0x281   :  { %3458 = vmatmul.mubr.msk.f32.gmra.mxu1 %vm757_vm10, %v5655_v40 }
 0x282   :  { %3392 = vmatmul.mubr.msk.f32.gmra.mxu0 %vm757_vm10, %v5651_v41  ;;  %3460 = vmatprep.mubr.msk.f32.mxu1 %vm757_vm10, %v4818_v54 }
 0x283   :  { %3394 = vmatprep.mubr.msk.f32.mxu0 %vm757_vm10, %v5652_v57 }
 0x285   :  { %3461 = vmatmul.mubr.msk.f32.gmra.mxu1 %vm757_vm10, %v4832_v50 }
 0x286   :  { %v3156_v37 = vpop.f32.mrf.mxu0  ;;  %3395 = vmatmul.mubr.msk.f32.gmra.mxu0 %vm757_vm10, %v5653_v14  ;;  %3463 = vmatprep.mubr.msk.f32.mxu1 %vm757_vm10, %v4856_v0 }
 0x287   :  { %v5137_v48 = vadd.f32 %v3216_v46, %v3156_v37  ;;  %3397 = vmatprep.mubr.msk.f32.mxu0 %vm757_vm10, %v5654_v39 }
 0x288   :  { %v1175_v36 = vpop.f32.mrf.mxu0 }
 0x289   :  { %5656 = vst [vmem:[#allocation28_spill] sm:$0xff] %v5137_v48  ;;  %v5141_v61 = vadd.f32 %v1490_v5, %v1175_v36  ;;  %3464 = vmatmul.mubr.msk.f32.gmra.mxu1 %vm757_vm10, %v4873_v47 }
 0x28a   :  { %3398 = vmatmul.mubr.msk.f32.gmra.mxu0 %vm757_vm10, %v5655_v40 }
 0x28b   :  { %5657 = vst [vmem:[#allocation26_spill] sm:$0xff] %v5141_v61  ;;  %3400 = vmatprep.mubr.msk.f32.mxu0 %vm757_vm10, %v4818_v54 }
 0x28e   :  { %3401 = vmatmul.mubr.msk.f32.gmra.mxu0 %vm757_vm10, %v4832_v50 }
 0x28f   :  { %3403 = vmatprep.mubr.msk.f32.mxu0 %vm757_vm10, %v4856_v0 }
 0x292   :  { %3404 = vmatmul.mubr.msk.f32.gmra.mxu0 %vm757_vm10, %v4873_v47 }
 0x296   :  { %v3219_v32 = vpop.f32.mrf.mxu1 }
 0x298   :  { %v1502_v9 = vpop.f32.mrf.mxu1 }
 0x29f   :  { %v3159_v30 = vpop.f32.mrf.mxu0 }
 0x2a0   :  { %v5155_v26 = vadd.f32 %v3219_v32, %v3159_v30 }
 0x2a1   :  { %v1195_v12 = vpop.f32.mrf.mxu0 }
 0x2a2   :  { %5658 = vst [vmem:[#allocation29_spill] sm:$0xff] %v5155_v26  ;;  %v5157_v20 = vadd.f32 %v1502_v9, %v1195_v12 }
 0x2a4   :  { %5659 = vst [vmem:[#allocation27_spill] sm:$0xff] %v5157_v20 }
 0x2b1   :  { %v3222_v2 = vpop.f32.mrf.mxu1 }
 0x2b3   :  { %v1514_v29 = vpop.f32.mrf.mxu1 }
 0x2ba   :  { %v3162_v35 = vpop.f32.mrf.mxu0 }
 0x2bb   :  { %v5159_v54 = vadd.f32 %v3222_v2, %v3162_v35 }
 0x2bc   :  { %v1215_v50 = vpop.f32.mrf.mxu0 }
 0x2bd   :  { %5660 = vst [vmem:[#allocation31_spill] sm:$0xff] %v5159_v54  ;;  %v5161_v1 = vadd.f32 %v1514_v29, %v1215_v50 }
 0x2bf   :  { %5661 = vst [vmem:[#allocation30_spill] sm:$0xff] %v5161_v1 }
 0x2c9   :  { %v3225_v0 = vpop.f32.mrf.mxu1 }
 0x2cb   :  { %v1526_v42 = vpop.f32.mrf.mxu1 }
 0x2cd   :  { %v5163_v21 = vpop.f32.mrf.mxu1 }
 0x2cf   :  { %v5165_v47 = vpop.f32.mrf.mxu1 }
 0x2d1   :  { %v5167_v19 = vpop.f32.mrf.mxu1 }
 0x2d2   :  { %v3165_v16 = vpop.f32.mrf.mxu0 }
 0x2d3   :  { %v5169_v43 = vadd.f32 %v3225_v0, %v3165_v16  ;;  %v5171_v28 = vpop.f32.mrf.mxu1 }
 0x2d4   :  { %v1235_v3 = vpop.f32.mrf.mxu0 }
 0x2d5   :  { %5662 = vst [vmem:[#allocation32_spill] sm:$0xff] %v5169_v43  ;;  %v5173_v4 = vadd.f32 %v1526_v42, %v1235_v3  ;;  %v5175_v60 = vpop.f32.mrf.mxu1 }
 0x2d6   :  { %v3240_v34 = vpop.f32.mrf.mxu0 }
 0x2d7   :  { %5663 = vst [vmem:[#allocation8_spill] sm:$0xff] %v5173_v4  ;;  %v5177_v63 = vpop.f32.mrf.mxu1 }
 0x2d8   :  { %v1616_v44 = vpop.f32.mrf.mxu0 }
 0x2d9   :  { %v5179_v13 = vpop.f32.mrf.mxu1 }
 0x2da   :  { %v3243_v33 = vpop.f32.mrf.mxu0 }
 0x2db   :  { %v5181_v58 = vpop.f32.mrf.mxu1 }
 0x2dc   :  { %v5183_v49 = vpop.f32.mrf.mxu0 }
 0x2dd   :  { %v5185_v25 = vpop.f32.mrf.mxu1 }
 0x2de   :  { %v5187_v15 = vpop.f32.mrf.mxu0 }
 0x2df   :  { %v5189_v27 = vpop.f32.mrf.mxu1 }
 0x2e0   :  { %v5191_v10 = vpop.f32.mrf.mxu0 }
 0x2e1   :  { %v5193_v62 = vpop.f32.mrf.mxu1 }
 0x2e2   :  { %v5195_v55 = vpop.f32.mrf.mxu0 }
 0x2e3   :  { %v5197_v18 = vpop.f32.mrf.mxu1 }
 0x2e4   :  { %v5199_v59 = vpop.f32.mrf.mxu0 }
 0x2e5   :  { %v5201_v41 = vpop.f32.mrf.mxu1 }
 0x2e6   :  { %v5203_v57 = vpop.f32.mrf.mxu0 }
 0x2e7   :  { %v5205_v14 = vpop.f32.mrf.mxu1 }
 0x2e8   :  { %v5207_v39 = vpop.f32.mrf.mxu0 }
 0x2e9   :  { %v5209_v40 = vpop.f32.mrf.mxu1 }
 0x2ea   :  { %v5211_v46 = vpop.f32.mrf.mxu0 }
 0x2eb   :  { %v5213_v37 = vpop.f32.mrf.mxu1 }
 0x2ec   :  { %v5215_v5 = vpop.f32.mrf.mxu0 }
 0x2ed   :  { %v5217_v36 = vpop.f32.mrf.mxu1 }
 0x2ee   :  { %5664 = vst [vmem:[#allocation24_spill] sm:$0xff] %v5217_v36  ;;  %v5219_v32 = vpop.f32.mrf.mxu0 }
 0x2ef   :  { %v5221_v30 = vpop.f32.mrf.mxu1 }
 0x2f0   :  { %5665 = vst [vmem:[#allocation15_spill] sm:$0xff] %v5221_v30  ;;  %v5223_v9 = vpop.f32.mrf.mxu0 }
 0x2f1   :  { %v5225_v12 = vpop.f32.mrf.mxu1 }
 0x2f2   :  { %5666 = vst [vmem:[#allocation5_spill] sm:$0xff] %v5225_v12  ;;  %v5227_v2 = vpop.f32.mrf.mxu0 }
 0x2f3   :  { %v5229_v35 = vpop.f32.mrf.mxu1 }
 0x2f4   :  { %5667 = vst [vmem:[#allocation19_spill] sm:$0xff] %v5229_v35  ;;  %v5231_v29 = vpop.f32.mrf.mxu0 }
 0x2f5   :  { %v5233_v50 = vpop.f32.mrf.mxu1 }
 0x2f6   :  { %5668 = vst [vmem:[#allocation18_spill] sm:$0xff] %v5233_v50  ;;  %v5235_v0 = vpop.f32.mrf.mxu0 }
 0x2f7   :  { %v5237_v42 = vpop.f32.mrf.mxu1 }
 0x2f8   :  { %5669 = vst [vmem:[#allocation7_spill] sm:$0xff] %v5237_v42  ;;  %v5239_v16 = vpop.f32.mrf.mxu0 }
 0x2f9   :  { %v5241_v3 = vpop.f32.mrf.mxu1 }
 0x2fa   :  { %5670 = vst [vmem:[#allocation20_spill] sm:$0xff] %v5241_v3  ;;  %v5243_v4 = vpop.f32.mrf.mxu0 }
 0x2fb   :  { %5671 = vst [vmem:[#allocation6_spill] sm:$0xff] %v5243_v4  ;;  %v5245_v43 = vpop.f32.mrf.mxu1 }
 0x2fc   :  { %5672 = vst [vmem:[#allocation10_spill] sm:$0xff] %v5245_v43  ;;  %v5247_v1 = vpop.f32.mrf.mxu0 }
 0x2fd   :  { %5673 = vst [vmem:[#allocation16_spill] sm:$0xff] %v5247_v1  ;;  %v5249_v54 = vpop.f32.mrf.mxu1 }
 0x2fe   :  { %5674 = vst [vmem:[#allocation17_spill] sm:$0xff] %v5249_v54  ;;  %v5251_v20 = vpop.f32.mrf.mxu0 }
 0x2ff   :  { %5675 = vst [vmem:[#allocation21_spill] sm:$0xff] %v5251_v20  ;;  %v5253_v26 = vpop.f32.mrf.mxu1 }
 0x300   :  { %5676 = vst [vmem:[#allocation37_spill] sm:$0xff] %v5253_v26  ;;  %v5255_v61 = vpop.f32.mrf.mxu0 }
 0x301   :  { %5677 = vst [vmem:[#allocation35_spill] sm:$0xff] %v5255_v61  ;;  %v5257_v48 = vpop.f32.mrf.mxu1 }
 0x302   :  { %5678 = vst [vmem:[#allocation42_spill] sm:$0xff] %v5257_v48  ;;  %v5259_v42 = vpop.f32.mrf.mxu0 }
 0x303   :  { %5679 = vst [vmem:[#allocation43_spill] sm:$0xff] %v5259_v42  ;;  %v5261_v56 = vpop.f32.mrf.mxu1 }
 0x304   :  { %5680 = vst [vmem:[#allocation44_spill] sm:$0xff] %v5261_v56  ;;  %v5263_v3 = vpop.f32.mrf.mxu0 }
 0x305   :  { %5681 = vst [vmem:[#allocation45_spill] sm:$0xff] %v5263_v3  ;;  %v5265_v50 = vpop.f32.mrf.mxu1 }
 0x306   :  { %5682 = vst [vmem:[#allocation46_spill] sm:$0xff] %v5265_v50  ;;  %v5267_v43 = vpop.f32.mrf.mxu0  ;;  %v5692_v50 = vld [vmem:[#allocation22_spill] sm:$0xff] }
 0x307   :  { %5683 = vst [vmem:[#allocation47_spill] sm:$0xff] %v5267_v43  ;;  %v5269_v38 = vpop.f32.mrf.mxu1  ;;  %v1624_v43 = vadd.f32 %v3240_v34, %v5692_v50 }
 0x308   :  { %5684 = vst [vmem:[#allocation48_spill] sm:$0xff] %v5269_v38  ;;  %v5271_v54 = vpop.f32.mrf.mxu0 }
 0x309   :  { %5685 = vst [vmem:[#allocation49_spill] sm:$0xff] %v5271_v54  ;;  %v5273_v35 = vpop.f32.mrf.mxu1  ;;  %v5694_v54 = vld [vmem:[#allocation33_spill] sm:$0xff] }
 0x30a   :  { %5686 = vst [vmem:[#allocation50_spill] sm:$0xff] %v5273_v35  ;;  %v5275_v26 = vpop.f32.mrf.mxu0  ;;  %v1617_v20 = vadd.f32 %v1616_v44, %v5694_v54 }
 0x30b   :  { %5687 = vst [vmem:[#allocation51_spill] sm:$0xff] %v5275_v26  ;;  %v5277_v61 = vpop.f32.mrf.mxu1  ;;  %v5696_v26 = vld [vmem:[#allocation23_spill] sm:$0xff] }
 0x30c   :  { %5688 = vst [vmem:[#allocation52_spill] sm:$0xff] %v5277_v61  ;;  %v5279_v48 = vpop.f32.mrf.mxu0  ;;  %v1638_v61 = vadd.f32 %v3243_v33, %v5696_v26  ;;  %v1913_v34 = vadd.f32 %v5165_v47, %v1617_v20  ;;  %v5700_v47 = vld [vmem:[#allocation39_spill] sm:$0xff] }
 0x30d   :  { %5689 = vst [vmem:[#allocation53_spill] sm:$0xff] %v5279_v48  ;;  %v3420_v42 = vpop.f32.mrf.mxu1  ;;  %v1921_v48 = vadd.f32 %v5163_v21, %v1624_v43  ;;  %v1645_v21 = vadd.f32 %v5191_v10, %v5699_v45 }
 0x30e   :  { %v5281_v56 = vpop.f32.mrf.mxu0  ;;  %v1937_v26 = vadd.f32 %v5167_v19, %v1638_v61 }
 0x30f   :  { %5690 = vst [vmem:[#allocation54_spill] sm:$0xff] %v5281_v56  ;;  %v2512_v3 = vpop.f32.mrf.mxu1  ;;  %v5697_v56 = vld [vmem:[#allocation34_spill] sm:$0xff] }
 0x310   :  { %v5283_v8 = vpop.f32.mrf.mxu0  ;;  %v1631_v7 = vadd.f32 %v5183_v49, %v5697_v56  ;;  %v1666_v49 = vadd.f32 %v5195_v55, %v5700_v47  ;;  %v1680_v55 = vadd.f32 %v5203_v57, %v4799_v53  ;;  %v1694_v53 = vadd.f32 %v5211_v46, %v4806_v22 }
 0x311   :  { %5691 = vst [vmem:[#allocation55_spill] sm:$0xff] %v5283_v8  ;;  %v3423_v12 = vpop.f32.mrf.mxu1  ;;  %v1708_v22 = vadd.f32 %v5219_v32, %v4829_v6  ;;  %v1722_v6 = vadd.f32 %v5227_v2, %v4875_v31  ;;  %v1736_v31 = vadd.f32 %v5235_v0, %v4941_v52 }
 0x312   :  { %v5286_v38 = vpop.f32.mrf.mxu0 }
 0x313   :  { %5693 = vst [vmem:[#allocation22_spill] sm:$0xff] %v5286_v38  ;;  %v2524_v35 = vpop.f32.mrf.mxu1  ;;  %v5698_v38 = vld [vmem:[#allocation36_spill] sm:$0xff] }
 0x314   :  { %v5289_v51 = vpop.f32.mrf.mxu0  ;;  %v1652_v54 = vadd.f32 %v5187_v15, %v5698_v38 }
 0x315   :  { %5695 = vst [vmem:[#allocation33_spill] sm:$0xff] %v5289_v51  ;;  %v3426_v30 = vpop.f32.mrf.mxu1 }
 0x316   :  { %v3360_v1 = vpop.f32.mrf.mxu0  ;;  %v1953_v61 = vadd.f32 %v5175_v60, %v1652_v54  ;;  %v1969_v60 = vadd.f32 %v5179_v13, %v1666_v49  ;;  %v1985_v13 = vadd.f32 %v5185_v25, %v1680_v55  ;;  %v2001_v25 = vadd.f32 %v5193_v62, %v1694_v53  ;;  %v5702_v49 = vld [vmem:[#allocation41_spill] sm:$0xff] }
 0x317   :  { %v2256_v8 = vadd.f32 %v3360_v1, %v1921_v48  ;;  %v2536_v36 = vpop.f32.mrf.mxu1  ;;  %v1929_v1 = vadd.f32 %v5171_v28, %v1631_v7  ;;  %v1945_v7 = vadd.f32 %v5177_v63, %v1645_v21  ;;  %v2017_v62 = vadd.f32 %v5201_v41, %v1708_v22  ;;  %v5712_v22 = vld [vmem:[#allocation13_spill] sm:$0xff] }
 0x318   :  { %v2249_v50 = vpop.f32.mrf.mxu0  ;;  %v2033_v41 = vadd.f32 %v5209_v40, %v1722_v6 }
 0x319   :  { %v2519_v44 = vadd.f32 %v3420_v42, %v2256_v8  ;;  %v2250_v4 = vadd.f32 %v2249_v50, %v1913_v34  ;;  %v3429_v51 = vpop.f32.mrf.mxu1  ;;  %v5701_v42 = vld [vmem:[#allocation40_spill] sm:$0xff] }
 0x31a   :  { %v3363_v33 = vpop.f32.mrf.mxu0  ;;  %v1659_v45 = vadd.f32 %v5199_v59, %v5701_v42  ;;  %v1673_v59 = vadd.f32 %v5207_v39, %v4804_v23  ;;  %v1687_v23 = vadd.f32 %v5215_v5, %v4808_v17  ;;  %v1701_v17 = vadd.f32 %v5223_v9, %v5702_v49  ;;  %v5714_v49 = vld [vmem:[#allocation19_spill] sm:$0xff] }
 0x31b   :  { %2703 = vst [vmem:[#allocation2 + $0x8] sm:$0xff] %v2519_v44  ;;  %v2513_v43 = vadd.f32 %v2512_v3, %v2250_v4  ;;  %v2268_v56 = vadd.f32 %v3363_v33, %v1937_v26  ;;  %v2548_v48 = vpop.f32.mrf.mxu1  ;;  %v1715_v9 = vadd.f32 %v5231_v29, %v4883_v11  ;;  %v1729_v11 = vadd.f32 %v5239_v16, %v4947_v24 }
 0x31c   :  { %v2261_v20 = vpop.f32.mrf.mxu0  ;;  %v1961_v63 = vadd.f32 %v5181_v58, %v1659_v45  ;;  %v1977_v58 = vadd.f32 %v5189_v27, %v1673_v59  ;;  %v1993_v27 = vadd.f32 %v5197_v18, %v1687_v23  ;;  %v2009_v18 = vadd.f32 %v5205_v14, %v1701_v17 }
 0x31d   :  { %2702 = vst [vmem:[#allocation2] sm:$0xff] %v2513_v43  ;;  %v2531_v8 = vadd.f32 %v3423_v12, %v2268_v56  ;;  %v2262_v38 = vadd.f32 %v2261_v20, %v1929_v1  ;;  %v3432_v15 = vpop.f32.mrf.mxu1  ;;  %v2025_v14 = vadd.f32 %v5213_v37, %v1715_v9  ;;  %v5719_v9 = vld [vmem:[#allocation45_spill] sm:$0xff] }
 0x31e   :  { %v3366_v19 = vpop.f32.mrf.mxu0 }
 0x31f   :  { %2705 = vst [vmem:[#allocation2 + $0x18] sm:$0xff] %v2531_v8  ;;  %v2525_v4 = vadd.f32 %v2524_v35, %v2262_v38  ;;  %v2280_v10 = vadd.f32 %v3366_v19, %v1953_v61  ;;  %v2560_v3 = vpop.f32.mrf.mxu1 }
 0x320   :  { %v2273_v28 = vpop.f32.mrf.mxu0 }
 0x321   :  { %2704 = vst [vmem:[#allocation2 + $0x10] sm:$0xff] %v2525_v4  ;;  %v2543_v12 = vadd.f32 %v3426_v30, %v2280_v10  ;;  %v2274_v34 = vadd.f32 %v2273_v28, %v1945_v7  ;;  %v3435_v50 = vpop.f32.mrf.mxu1 }
 0x322   :  { %v3369_v54 = vpop.f32.mrf.mxu0 }
 0x323   :  { %2707 = vst [vmem:[#allocation2 + $0x28] sm:$0xff] %v2543_v12  ;;  %v2537_v35 = vadd.f32 %v2536_v36, %v2274_v34  ;;  %v2292_v44 = vadd.f32 %v3369_v54, %v1969_v60  ;;  %v2572_v26 = vpop.f32.mrf.mxu1  ;;  %v5704_v60 = vld [vmem:[#allocation6_spill] sm:$0xff] }
 0x324   :  { %v2285_v33 = vpop.f32.mrf.mxu0 }
 0x325   :  { %2706 = vst [vmem:[#allocation2 + $0x20] sm:$0xff] %v2537_v35  ;;  %v2555_v57 = vadd.f32 %v3429_v51, %v2292_v44  ;;  %v2286_v30 = vadd.f32 %v2285_v33, %v1961_v63  ;;  %v3438_v21 = vpop.f32.mrf.mxu1  ;;  %v5705_v35 = vld [vmem:[#allocation24_spill] sm:$0xff] }
 0x326   :  { %v3372_v43 = vpop.f32.mrf.mxu0  ;;  %v2049_v40 = vadd.f32 %v5705_v35, %v1736_v31  ;;  %v5707_v63 = vld [vmem:[#allocation16_spill] sm:$0xff] }
 0x327   :  { %2709 = vst [vmem:[#allocation2 + $0x38] sm:$0xff] %v2555_v57  ;;  %v2549_v39 = vadd.f32 %v2548_v48, %v2286_v30  ;;  %v2304_v36 = vadd.f32 %v3372_v43, %v1985_v13  ;;  %v2584_v56 = vpop.f32.mrf.mxu1  ;;  %v5708_v57 = vld [vmem:[#allocation15_spill] sm:$0xff]  ;;  %v5710_v13 = vld [vmem:[#allocation21_spill] sm:$0xff] }
 0x328   :  { %v2297_v1 = vpop.f32.mrf.mxu0  ;;  %v2041_v37 = vadd.f32 %v5708_v57, %v1729_v11 }
 0x329   :  { %2708 = vst [vmem:[#allocation2 + $0x30] sm:$0xff] %v2549_v39  ;;  %v2567_v51 = vadd.f32 %v3432_v15, %v2304_v36  ;;  %v2298_v46 = vadd.f32 %v2297_v1, %v1977_v58  ;;  %v3441_v20 = vpop.f32.mrf.mxu1 }
 0x32a   :  { %v3375_v47 = vpop.f32.mrf.mxu0 }
 0x32b   :  { %2711 = vst [vmem:[#allocation2 + $0x48] sm:$0xff] %v2567_v51  ;;  %v2561_v5 = vadd.f32 %v2560_v3, %v2298_v46  ;;  %v2316_v48 = vadd.f32 %v3375_v47, %v2001_v25  ;;  %v2596_v8 = vpop.f32.mrf.mxu1  ;;  %v5713_v51 = vld [vmem:[#allocation35_spill] sm:$0xff] }
 0x32c   :  { %v2309_v38 = vpop.f32.mrf.mxu0  ;;  %v1757_v46 = vadd.f32 %v5713_v51, %v5712_v22 }
 0x32d   :  { %2710 = vst [vmem:[#allocation2 + $0x40] sm:$0xff] %v2561_v5  ;;  %v2579_v32 = vadd.f32 %v3435_v50, %v2316_v48  ;;  %v2310_v15 = vadd.f32 %v2309_v38, %v1993_v27  ;;  %v3444_v61 = vpop.f32.mrf.mxu1  ;;  %v5703_v50 = vld [vmem:[#allocation9_spill] sm:$0xff]  ;;  %v5715_v48 = vld [vmem:[#allocation14_spill] sm:$0xff] }
 0x32e   :  { %v3378_v19 = vpop.f32.mrf.mxu0  ;;  %v1750_v52 = vadd.f32 %v5704_v60, %v5703_v50  ;;  %v5724_v50 = vld [vmem:[#allocation26_spill] sm:$0xff]  ;;  %v5725_v60 = vld [vmem:[#allocation49_spill] sm:$0xff] }
 0x32f   :  { %2713 = vst [vmem:[#allocation2 + $0x58] sm:$0xff] %v2579_v32  ;;  %v2573_v42 = vadd.f32 %v2572_v26, %v2310_v15  ;;  %v2328_v45 = vadd.f32 %v3378_v19, %v2017_v62  ;;  %v2608_v4 = vpop.f32.mrf.mxu1  ;;  %v5706_v26 = vld [vmem:[#allocation11_spill] sm:$0xff]  ;;  %v5717_v15 = vld [vmem:[#allocation18_spill] sm:$0xff]  ;;  %v5718_v19 = vld [vmem:[#allocation25_spill] sm:$0xff] }
 0x330   :  { %v2321_v10 = vpop.f32.mrf.mxu0  ;;  %v1743_v24 = vadd.f32 %v5707_v63, %v5706_v26  ;;  %v5728_v26 = vld [vmem:[#allocation51_spill] sm:$0xff] }
 0x331   :  { %2712 = vst [vmem:[#allocation2 + $0x50] sm:$0xff] %v2573_v42  ;;  %v2591_v2 = vadd.f32 %v3438_v21, %v2328_v45  ;;  %v2322_v3 = vadd.f32 %v2321_v10, %v2009_v18  ;;  %v3447_v7 = vpop.f32.mrf.mxu1  ;;  %v5709_v21 = vld [vmem:[#allocation12_spill] sm:$0xff]  ;;  %v1771_v42 = vadd.f32 %v5719_v9, %v5718_v19  ;;  %v5720_v10 = vld [vmem:[#allocation7_spill] sm:$0xff]  ;;  %v5741_v9 = vld [vmem:[#allocation46_spill] sm:$0xff] }
 0x332   :  { %v3381_v28 = vpop.f32.mrf.mxu0  ;;  %v1764_v43 = vadd.f32 %v5710_v13, %v5709_v21  ;;  %v2057_v17 = vadd.f32 %v5714_v49, %v1743_v24  ;;  %v2073_v31 = vadd.f32 %v5720_v10, %v1757_v46  ;;  %v5731_v21 = vld [vmem:[#allocation53_spill] sm:$0xff]  ;;  %v5735_v46 = vld [vmem:[#allocation42_spill] sm:$0xff]  ;;  %v5742_v10 = vld [vmem:[#allocation8_spill] sm:$0xff] }
 0x333   :  { %2715 = vst [vmem:[#allocation2 + $0x68] sm:$0xff] %v2591_v2  ;;  %v2585_v29 = vadd.f32 %v2584_v56, %v2322_v3  ;;  %v2340_v55 = vadd.f32 %v3381_v28, %v2033_v41  ;;  %v2620_v12 = vpop.f32.mrf.mxu1  ;;  %v5711_v56 = vld [vmem:[#allocation5_spill] sm:$0xff]  ;;  %v5721_v3 = vld [vmem:[#allocation28_spill] sm:$0xff]  ;;  %v5722_v41 = vld [vmem:[#allocation47_spill] sm:$0xff] }
 0x334   :  { %v2333_v34 = vpop.f32.mrf.mxu0  ;;  %v2065_v58 = vadd.f32 %v5711_v56, %v1750_v52  ;;  %v1792_v28 = vadd.f32 %v5722_v41, %v5721_v3  ;;  %v1785_v52 = vadd.f32 %v5725_v60, %v5724_v50  ;;  %v5744_v41 = vld [vmem:[#allocation48_spill] sm:$0xff] }
 0x335   :  { %2714 = vst [vmem:[#allocation2 + $0x60] sm:$0xff] %v2585_v29  ;;  %v2603_v0 = vadd.f32 %v3441_v20, %v2340_v55  ;;  %v2334_v54 = vadd.f32 %v2333_v34, %v2025_v14  ;;  %v3450_v59 = vpop.f32.mrf.mxu1  ;;  %v5723_v29 = vld [vmem:[#allocation20_spill] sm:$0xff] }
 0x336   :  { %v3384_v44 = vpop.f32.mrf.mxu0 }
 0x337   :  { %2717 = vst [vmem:[#allocation2 + $0x78] sm:$0xff] %v2603_v0  ;;  %v2597_v16 = vadd.f32 %v2596_v8, %v2334_v54  ;;  %v2352_v33 = vadd.f32 %v3384_v44, %v2049_v40  ;;  %v2632_v53 = vpop.f32.mrf.mxu1  ;;  %v5716_v8 = vld [vmem:[#allocation43_spill] sm:$0xff]  ;;  %v5726_v54 = vld [vmem:[#allocation10_spill] sm:$0xff]  ;;  %v5727_v44 = vld [vmem:[#allocation29_spill] sm:$0xff] }
 0x338   :  { %v2345_v30 = vpop.f32.mrf.mxu0  ;;  %v1778_v27 = vadd.f32 %v5716_v8, %v5715_v48  ;;  %v2089_v35 = vadd.f32 %v5726_v54, %v1771_v42  ;;  %v1806_v63 = vadd.f32 %v5728_v26, %v5727_v44 }
 0x339   :  { %2716 = vst [vmem:[#allocation2 + $0x70] sm:$0xff] %v2597_v16  ;;  %v2615_v23 = vadd.f32 %v3444_v61, %v2352_v33  ;;  %v2346_v39 = vadd.f32 %v2345_v30, %v2041_v37  ;;  %v3453_v36 = vpop.f32.mrf.mxu1  ;;  %v2081_v61 = vadd.f32 %v5717_v15, %v1764_v43  ;;  %v5729_v16 = vld [vmem:[#allocation17_spill] sm:$0xff]  ;;  %v5730_v30 = vld [vmem:[#allocation27_spill] sm:$0xff]  ;;  %v5739_v15 = vld [vmem:[#allocation32_spill] sm:$0xff] }
 0x33a   :  { %v3387_v1 = vpop.f32.mrf.mxu0  ;;  %v2097_v55 = vadd.f32 %v5723_v29, %v1778_v27  ;;  %v2113_v33 = vadd.f32 %v5729_v16, %v1792_v28  ;;  %v1799_v13 = vadd.f32 %v5731_v21, %v5730_v30  ;;  %v5738_v27 = vld [vmem:[#allocation44_spill] sm:$0xff] }
 0x33b   :  { %2719 = vst [vmem:[#allocation2 + $0x88] sm:$0xff] %v2615_v23  ;;  %v2609_v20 = vadd.f32 %v2608_v4, %v2346_v39  ;;  %v2364_v25 = vadd.f32 %v3387_v1, %v2065_v58  ;;  %v2644_v47 = vpop.f32.mrf.mxu1  ;;  %v5732_v23 = vld [vmem:[#allocation37_spill] sm:$0xff]  ;;  %v5733_v58 = vld [vmem:[#allocation31_spill] sm:$0xff]  ;;  %v5734_v1 = vld [vmem:[#allocation54_spill] sm:$0xff] }
 0x33c   :  { %v2357_v5 = vpop.f32.mrf.mxu0  ;;  %v2105_v39 = vadd.f32 %v5732_v23, %v1785_v52  ;;  %v1820_v22 = vadd.f32 %v5734_v1, %v5733_v58 }
 0x33d   :  { %2718 = vst [vmem:[#allocation2 + $0x80] sm:$0xff] %v2609_v20  ;;  %v2627_v38 = vadd.f32 %v3447_v7, %v2364_v25  ;;  %v2358_v6 = vadd.f32 %v2357_v5, %v2057_v17  ;;  %v3456_v32 = vpop.f32.mrf.mxu1  ;;  %v2129_v20 = vadd.f32 %v5735_v46, %v1806_v63  ;;  %v5736_v17 = vld [vmem:[#allocation30_spill] sm:$0xff]  ;;  %v5737_v5 = vld [vmem:[#allocation55_spill] sm:$0xff] }
 0x33e   :  { %v3390_v62 = vpop.f32.mrf.mxu0  ;;  %v1813_v48 = vadd.f32 %v5737_v5, %v5736_v17  ;;  %v2145_v42 = vadd.f32 %v5741_v9, %v1820_v22 }
 0x33f   :  { %2721 = vst [vmem:[#allocation2 + $0x98] sm:$0xff] %v2627_v38  ;;  %v2621_v45 = vadd.f32 %v2620_v12, %v2358_v6  ;;  %v2376_v4 = vadd.f32 %v3390_v62, %v2081_v61  ;;  %v2656_v18 = vpop.f32.mrf.mxu1  ;;  %v2121_v38 = vadd.f32 %v5738_v27, %v1799_v13  ;;  %v5740_v61 = vld [vmem:[#allocation22_spill] sm:$0xff] }
 0x340   :  { %v2369_v2 = vpop.f32.mrf.mxu0  ;;  %v1834_v62 = vadd.f32 %v5740_v61, %v5739_v15  ;;  %v2137_v28 = vadd.f32 %v5744_v41, %v1813_v48 }
 0x341   :  { %2720 = vst [vmem:[#allocation2 + $0x90] sm:$0xff] %v2621_v45  ;;  %v2639_v7 = vadd.f32 %v3450_v59, %v2376_v4  ;;  %v2370_v11 = vadd.f32 %v2369_v2, %v2073_v31  ;;  %v3459_v14 = vpop.f32.mrf.mxu1  ;;  %v5743_v31 = vld [vmem:[#allocation33_spill] sm:$0xff] }
 0x342   :  { %v3393_v34 = vpop.f32.mrf.mxu0  ;;  %v1827_v2 = vadd.f32 %v5743_v31, %v5742_v10 }
 0x343   :  { %2723 = vst [vmem:[#allocation2 + $0xa8] sm:$0xff] %v2639_v7  ;;  %v2633_v12 = vadd.f32 %v2632_v53, %v2370_v11  ;;  %v2388_v0 = vadd.f32 %v3393_v34, %v2097_v55  ;;  %v2668_v57 = vpop.f32.mrf.mxu1  ;;  %v5745_v55 = vld [vmem:[#allocation50_spill] sm:$0xff] }
 0x344   :  { %v2381_v40 = vpop.f32.mrf.mxu0  ;;  %v2161_v34 = vadd.f32 %v5745_v55, %v1834_v62 }
 0x345   :  { %2722 = vst [vmem:[#allocation2 + $0xa0] sm:$0xff] %v2633_v12  ;;  %v2651_v24 = vadd.f32 %v3453_v36, %v2388_v0  ;;  %v2382_v59 = vadd.f32 %v2381_v40, %v2089_v35  ;;  %v3462_v25 = vpop.f32.mrf.mxu1  ;;  %v5746_v12 = vld [vmem:[#allocation52_spill] sm:$0xff] }
 0x346   :  { %v3396_v37 = vpop.f32.mrf.mxu0  ;;  %v2153_v0 = vadd.f32 %v5746_v12, %v1827_v2 }
 0x347   :  { %2725 = vst [vmem:[#allocation2 + $0xb8] sm:$0xff] %v2651_v24  ;;  %v2645_v43 = vadd.f32 %v2644_v47, %v2382_v59  ;;  %v2400_v53 = vadd.f32 %v3396_v37, %v2113_v33  ;;  %v2680_v45 = vpop.f32.mrf.mxu1 }
 0x348   :  { %v2393_v56 = vpop.f32.mrf.mxu0 }
 0x349   :  { %2724 = vst [vmem:[#allocation2 + $0xb0] sm:$0xff] %v2645_v43  ;;  %v2663_v51 = vadd.f32 %v3456_v32, %v2400_v53  ;;  %v2394_v36 = vadd.f32 %v2393_v56, %v2105_v39 }
 0x34a   :  { %v3399_v49 = vpop.f32.mrf.mxu0 }
 0x34b   :  { %2727 = vst [vmem:[#allocation2 + $0xc8] sm:$0xff] %v2663_v51  ;;  %v2657_v8 = vadd.f32 %v2656_v18, %v2394_v36  ;;  %v2412_v47 = vadd.f32 %v3399_v49, %v2129_v20 }
 0x34c   :  { %v2405_v6 = vpop.f32.mrf.mxu0 }
 0x34d   :  { %2726 = vst [vmem:[#allocation2 + $0xc0] sm:$0xff] %v2657_v8  ;;  %v2675_v19 = vadd.f32 %v3459_v14, %v2412_v47  ;;  %v2406_v32 = vadd.f32 %v2405_v6, %v2121_v38  ;;  %v3465_v14 = vpop.f32.mrf.mxu1 }
 0x34e   :  { %v3402_v4 = vpop.f32.mrf.mxu0 }
 0x34f   :  { %2729 = vst [vmem:[#allocation2 + $0xd8] sm:$0xff] %v2675_v19  ;;  %v2669_v3 = vadd.f32 %v2668_v57, %v2406_v32  ;;  %v2424_v18 = vadd.f32 %v3402_v4, %v2145_v42  ;;  %v2692_v44 = vpop.f32.mrf.mxu1 }
 0x350   :  { %v2417_v7 = vpop.f32.mrf.mxu0 }
 0x351   :  { %2728 = vst [vmem:[#allocation2 + $0xd0] sm:$0xff] %v2669_v3  ;;  %v2687_v11 = vadd.f32 %v3462_v25, %v2424_v18  ;;  %v2418_v29 = vadd.f32 %v2417_v7, %v2137_v28 }
 0x352   :  { %v3405_v50 = vpop.f32.mrf.mxu0 }
 0x353   :  { %2731 = vst [vmem:[#allocation2 + $0xe8] sm:$0xff] %v2687_v11  ;;  %v2681_v60 = vadd.f32 %v2680_v45, %v2418_v29  ;;  %v2436_v52 = vadd.f32 %v3405_v50, %v2161_v34 }
 0x354   :  { %v2429_v54 = vpop.f32.mrf.mxu0 }
 0x355   :  { %2730 = vst [vmem:[#allocation2 + $0xe0] sm:$0xff] %v2681_v60  ;;  %v2699_v35 = vadd.f32 %v3465_v14, %v2436_v52  ;;  %v2430_v40 = vadd.f32 %v2429_v54, %v2153_v0 }
 0x357   :  { %2733 = vst [vmem:[#allocation2 + $0xf8] sm:$0xff] %v2699_v35  ;;  %v2693_v26 = vadd.f32 %v2692_v44, %v2430_v40 }
 0x359   :  { %2732 = vst [vmem:[#allocation2 + $0xf0] sm:$0xff] %v2693_v26 }
 0x35a   :  { %3550 = shalt.err (!%p3547_p4)
}
 0x35b   :  { %s3567_s30 = smov 128   ;;  %s3568_s3 = smov 8  }
 0x35c   :  { %2745 = dma.vmem_to_hbm [thread:$0]  %s2740_s28, 4096, %s5387_s2, [#allocation3], %s3567_s30, %s3567_s30, %s3568_s3  }
 0x35d   :  { %3559 = dma.done.wait [#allocation3], 4096  }
 0x35e   :  { %3560 = vsyncadd [#allocation3], 4294963200 }
 0x35f   :  { %2749 = vsyncpa [#allocation3], 1 }

</bundles_post_ra>
